<compile_context>
chip_gen: v7x
topology: tpu7x:2x2x1
jax: 0.10.0
libtpu: 0.0.40
codegen_flags: <defaults>
</compile_context>

<pallas_src>
import functools
import math

import jax
import jax.numpy as jnp
from jax.experimental import pallas as pl
from jax.experimental.pallas import tpu as pltpu


# --------------------------------------------------------------------------
# Kernel 1: row-tiled L2 normalization of the full embedding table.
# Not called in forward() anymore (rows are normalized inside the GNN kernel);
# kept for callers that need the full normalized table (compute_scores).
# --------------------------------------------------------------------------
def _embed_norm_kernel(w_ref, o_ref):
    w = w_ref[...]
    ssq = jnp.sum(w * w, axis=1, keepdims=True)
    # eps guard: all-zero rows map to zero instead of NaN/Inf (torch divides).
    o_ref[...] = (w * jax.lax.rsqrt(jnp.maximum(ssq, 1e-24))).astype(o_ref.dtype)


def normalize_embedding(w, *, tile_rows=1024):
    V, H = w.shape
    TV = min(int(tile_rows), V)         # TV == V (full) or a multiple of 8
    return pl.pallas_call(
        _embed_norm_kernel,
        out_shape=jax.ShapeDtypeStruct((V, H), w.dtype),
        grid=(pl.cdiv(V, TV),),         # partial last block: no host pad/slice
        in_specs=[pl.BlockSpec((TV, H), lambda i: (i, 0))],
        out_specs=pl.BlockSpec((TV, H), lambda i: (i, 0)),
        compiler_params=pltpu.CompilerParams(dimension_semantics=("parallel",)),
    )(w)


# --------------------------------------------------------------------------
# Kernel 2: fused (row-normalize + hidden_avg + gated GNN cell), TB examples
# per grid step.  All shapes inside are padded: Sp % 8 == 0, Hp % 128 == 0.
# --------------------------------------------------------------------------
def _gnn_kernel(step, s_orig, use_vpu_mp,
                a_in_ref, a_out_ref, h_ref,
                w_edge_ref, w_gi_ref, w_gh_ref, b_em_ref, b_g_ref,
                h_out_ref, avg_ref):
    h3 = h_ref[...]                                    # (TB, Sp, Hp) f32, un-normalized
    TB, Sp, Hp = h3.shape
    N = TB * Sp

    # Fused row L2-normalization of the gathered embedding rows (padded lanes
    # are zero, so the sum of squares equals the un-padded one).
    ssq = jnp.sum(h3 * h3, axis=2, keepdims=True)
    h3 = h3 * jax.lax.rsqrt(jnp.maximum(ssq, 1e-24))

    # hidden_avg from the (normalized) pre-GNN hidden; divide by the real S.
    avg_ref[...] = (jnp.sum(h3, axis=1, keepdims=True)
                    * (1.0 / float(s_orig))).astype(avg_ref.dtype)

    # Loop-invariant operand reads, hoisted once per grid step.
    w_edge = w_edge_ref[...]                           # (Hp, 2Hp)  compute dtype
    w_gi = w_gi_ref[...]                               # (2Hp, 3Hp)
    w_gh = w_gh_ref[...]                               # (Hp, 3Hp)
    cdt = w_edge.dtype
    b_edge = b_em_ref[0:1, :]                          # (1, 2Hp) f32
    b_msg = b_em_ref[1:2, :]                           # (1, 2Hp) f32
    b_gi = b_g_ref[0:1, :]                             # (1, 3Hp) f32
    b_gh = b_g_ref[1:2, :]                             # (1, 3Hp) f32

    if use_vpu_mp:
        # message passing runs on the VPU in f32 (keeps f32 accumulation even
        # on the bf16 path, and keeps the MXU free for the dense gate matmuls)
        A_in = a_in_ref[...].astype(jnp.float32)       # (TB, Sp, Sp)
        A_out = a_out_ref[...].astype(jnp.float32)
    else:
        A_in = a_in_ref[...]
        A_out = a_out_ref[...]

    def message_pass(A3, E3):                          # (TB,Sp,Sp) x (TB,Sp,Hp) f32
        if use_vpu_mp:
            # unrolled broadcast-multiply-accumulate over the S contraction
            acc = A3[:, :, 0:1] * E3[:, 0:1, :]
            for j in range(1, Sp):
                acc = acc + A3[:, :, j:j + 1] * E3[:, j:j + 1, :]
            return acc
        return jnp.einsum("bij,bjh->bih", A3, E3.astype(cdt),
                          preferred_element_type=jnp.float32)

    def cell(h_prev):                                  # h_prev: (N, Hp) f32
        hc = h_prev.astype(cdt)
        # single wide edge matmul -> [edge_in | edge_out]
        edge = jnp.dot(hc, w_edge, preferred_element_type=jnp.float32) + b_edge
        ein3 = edge[:, :Hp].reshape(TB, Sp, Hp)        # lane-aligned slices
        eout3 = edge[:, Hp:].reshape(TB, Sp, Hp)
        mi = message_pass(A_in, ein3)                  # (TB, Sp, Hp) f32
        mo = message_pass(A_out, eout3)
        msgs = (jnp.concatenate([mi, mo], axis=2).reshape(N, 2 * Hp) + b_msg)
        # all three gates in one (N,2Hp)@(2Hp,3Hp) and one (N,Hp)@(Hp,3Hp)
        gi = jnp.dot(msgs.astype(cdt), w_gi, preferred_element_type=jnp.float32) + b_gi
        gh = jnp.dot(hc, w_gh, preferred_element_type=jnp.float32) + b_gh
        rg = jax.nn.sigmoid(gi[:, :Hp] + gh[:, :Hp])
        ig = jax.nn.sigmoid(gi[:, Hp:2 * Hp] + gh[:, Hp:2 * Hp])
        ng = jnp.tanh(gi[:, 2 * Hp:] + rg * gh[:, 2 * Hp:])
        return ng + ig * (h_prev - ng)

    h = h3.reshape(N, Hp)
    if step <= 2:
        for _ in range(step):
            h = cell(h)
    else:
        h = jax.lax.fori_loop(0, step, lambda _, hh: cell(hh), h, unroll=True)

    h_out_ref[...] = h.reshape(TB, Sp, Hp).astype(h_out_ref.dtype)


# --------------------------------------------------------------------------
# Host-side weight packing: transpose to (in, out), gate-block, zero-pad.
# --------------------------------------------------------------------------
def _pack_gnn_params(params, H, Hp, compute_dtype):
    cdt = compute_dtype
    f32 = jnp.float32

    def padw(w, r, c):
        return jnp.zeros((r, c), f32).at[:w.shape[0], :w.shape[1]].set(w.astype(f32))

    def padv(v, n):
        return jnp.zeros((n,), f32).at[:v.shape[0]].set(v.astype(f32))

    # edge linears: (out,in) -> (in,out), packed [in | out] along columns
    w_edge = jnp.concatenate([padw(params["w_edge_in"].T, Hp, Hp),
                              padw(params["w_edge_out"].T, Hp, Hp)],
                             axis=1).astype(cdt)                     # (Hp, 2Hp)

    # w_ih: (3H, 2H) -> (2Hp, 3Hp); rows = [msg_in | msg_out], cols = gate blocks
    w_ihT = params["w_ih"].T.astype(f32)                             # (2H, 3H)
    w_gi = jnp.zeros((2 * Hp, 3 * Hp), f32)
    for g in range(3):
        w_gi = w_gi.at[0:H, g * Hp:g * Hp + H].set(w_ihT[0:H, g * H:(g + 1) * H])
        w_gi = w_gi.at[Hp:Hp + H, g * Hp:g * Hp + H].set(w_ihT[H:2 * H, g * H:(g + 1) * H])
    w_gi = w_gi.astype(cdt)

    # w_hh: (3H, H) -> (Hp, 3Hp) gate-blocked
    w_hhT = params["w_hh"].T.astype(f32)                             # (H, 3H)
    w_gh = jnp.zeros((Hp, 3 * Hp), f32)
    for g in range(3):
        w_gh = w_gh.at[0:H, g * Hp:g * Hp + H].set(w_hhT[:, g * H:(g + 1) * H])
    w_gh = w_gh.astype(cdt)

    b_edge = jnp.concatenate([padv(params["b_edge_in"], Hp),
                              padv(params["b_edge_out"], Hp)])
    b_msg = jnp.concatenate([padv(params["b_iah"], Hp),
                             padv(params["b_oah"], Hp)])
    b_em = jnp.stack([b_edge, b_msg], axis=0)                        # (2, 2Hp) f32

    b_gi = jnp.zeros((3, Hp), f32).at[:, :H].set(
        params["b_ih"].reshape(3, H).astype(f32)).reshape(3 * Hp)
    b_gh = jnp.zeros((3, Hp), f32).at[:, :H].set(
        params["b_hh"].reshape(3, H).astype(f32)).reshape(3 * Hp)
    b_g = jnp.stack([b_gi, b_gh], axis=0)                            # (2, 3Hp) f32

    return w_edge, w_gi, w_gh, b_em, b_g


def _gnn_vmem_bytes(TB, Sp, Hp, cdt_bytes, use_vpu_mp):
    weights = 11 * Hp * Hp * cdt_bytes + 10 * Hp * 4
    resident = 2 * weights                                    # assume dbl-buffered
    io = 2 * (2 * TB * Sp * Sp * cdt_bytes + TB * Sp * Hp * 4)
    out = 2 * (TB * Sp * Hp * 4 + TB * Hp * 4)
    temps = 16 * TB * Sp * Hp * 4 + (2 * TB * Sp * Sp * 4 if use_vpu_mp else 0)
    return resident + io + out + temps


def _choose_tb(B, Sp, block_b):
    if block_b is not None:
        return max(1, min(int(block_b), B))
    tb = max(1, 256 // Sp)              # target >= 256 MXU rows per grid step
    tb = min(tb, B)
    if B >= 2 and tb >= B:              # keep >= 2 grid steps for v7x's 2nd TC
        tb = max(1, -(-B // 2))
    return tb


def gnn_forward(A, hidden0, params, step, *, block_b=None,
                compute_dtype=jnp.bfloat16):
    """hidden0 = raw gathered embedding rows (un-normalized); normalization,
    hidden_avg and the GRU-style propagation are fused in one kernel."""
    B, S, H = hidden0.shape
    Hp = -(-H // 128) * 128             # lane-dense padding (>=128)
    Sp = -(-S // 8) * 8                 # sublane-friendly padding
    cdt = jnp.dtype(compute_dtype)
    use_vpu_mp = Sp <= 16               # small-S message passing on the VPU

    TB = _choose_tb(B, Sp, block_b)
    budget = 40 * 1024 * 1024
    while TB > 1 and _gnn_vmem_bytes(TB, Sp, Hp, cdt.itemsize, use_vpu_mp) > budget:
        TB = max(1, TB // 2)
    Bp = -(-B // TB) * TB

    # Pad A / hidden0 once in the wrapper; padded rows/cols/lanes are zero so
    # they never leak into real outputs (and are sliced off at the end).
    A = A.astype(cdt)
    A_in = jnp.zeros((Bp, Sp, Sp), cdt).at[:B, :S, :S].set(A[:, :, :S])
    A_out = jnp.zeros((Bp, Sp, Sp), cdt).at[:B, :S, :S].set(A[:, :, S:2 * S])
    h0 = jnp.zeros((Bp, Sp, Hp), jnp.float32).at[:B, :S, :H].set(
        hidden0.astype(jnp.float32))

    w_edge, w_gi, w_gh, b_em, b_g = _pack_gnn_params(params, H, Hp, cdt)

    kernel = functools.partial(_gnn_kernel, int(step), int(S), bool(use_vpu_mp))
    hidden, hidden_avg = pl.pallas_call(
        kernel,
        out_shape=(jax.ShapeDtypeStruct((Bp, Sp, Hp), jnp.float32),
                   jax.ShapeDtypeStruct((Bp, 1, Hp), jnp.float32)),
        grid=(Bp // TB,),
        in_specs=[
            pl.BlockSpec((TB, Sp, Sp), lambda b: (b, 0, 0)),        # A_in
            pl.BlockSpec((TB, Sp, Sp), lambda b: (b, 0, 0)),        # A_out
            pl.BlockSpec((TB, Sp, Hp), lambda b: (b, 0, 0)),        # gathered rows
            # constant index maps -> resident weights, no re-DMA per block
            pl.BlockSpec((Hp, 2 * Hp), lambda b: (0, 0)),           # w_edge
            pl.BlockSpec((2 * Hp, 3 * Hp), lambda b: (0, 0)),       # w_gi
            pl.BlockSpec((Hp, 3 * Hp), lambda b: (0, 0)),           # w_gh
            pl.BlockSpec((2, 2 * Hp), lambda b: (0, 0)),            # [b_edge; b_msg]
            pl.BlockSpec((2, 3 * Hp), lambda b: (0, 0)),            # [b_ih; b_hh]
        ],
        out_specs=(pl.BlockSpec((TB, Sp, Hp), lambda b: (b, 0, 0)),
                   pl.BlockSpec((TB, 1, Hp), lambda b: (b, 0, 0))),
        compiler_params=pltpu.CompilerParams(
            dimension_semantics=("parallel",),
            vmem_limit_bytes=48 * 1024 * 1024),
    )(A_in, A_out, h0, w_edge, w_gi, w_gh, b_em, b_g)

    return hidden[:B, :S, :H], hidden_avg[:B, :, :H]


# --------------------------------------------------------------------------
# SessionGraph.forward  (returns hidden, time_emb, hidden_avg)
# --------------------------------------------------------------------------
def session_graph_forward(params, inputs, A, times, step=1, *,
                          block_b=None, compute_dtype=jnp.bfloat16):
    # Torch normalizes embedding.weight IN PLACE and then gathers.  The
    # normalization is row-wise, so we gather first and normalize only the
    # gathered rows inside the GNN kernel (O(B*S*H) instead of O(V*H)).
    # TODO(synk): the in-place table normalization is a side effect consumed
    # later by compute_scores; callers needing the full normalized table must
    # call normalize_embedding(params["embedding"]) themselves.
    hidden0 = jnp.take(params["embedding"], inputs, axis=0)          # (B, S, H)
    time_emb = jnp.take(params["time_embedding"], times, axis=0)     # (B, S, H)
    # TODO(synk): the embedding/time gathers could be fused into the GNN kernel
    # via PrefetchScalarGridSpec + pl.Element row-gather index maps.
    hidden, hidden_avg = gnn_forward(A, hidden0, params, step,
                                     block_b=block_b, compute_dtype=compute_dtype)
    return hidden, time_emb, hidden_avg

# TODO(synk): ome.OME memory cell, compute_scores and positional embeddings are
# not part of forward(); not implemented.


# --------------------------------------------------------------------------
# Pure-JAX reference (for correctness check only)
# --------------------------------------------------------------------------
def _reference_forward(params, inputs, A, times, step=1):
    w = params["embedding"]
    w = w / jnp.linalg.norm(w, axis=1, keepdims=True)
    hidden = jnp.take(w, inputs, axis=0)
    time_emb = jnp.take(params["time_embedding"], times, axis=0)
    hidden_avg = jnp.sum(hidden, axis=1, keepdims=True) / hidden.shape[1]
    S, H = hidden.shape[1], hidden.shape[2]
    h = hidden
    for _ in range(step):
        edge_in = h @ params["w_edge_in"].T + params["b_edge_in"]
        edge_out = h @ params["w_edge_out"].T + params["b_edge_out"]
        input_in = jnp.einsum("bij,bjh->bih", A[:, :, :S], edge_in) + params["b_iah"]
        input_out = jnp.einsum("bij,bjh->bih", A[:, :, S:2 * S], edge_out) + params["b_oah"]
        inp = jnp.concatenate([input_in, input_out], axis=2)
        gi = inp @ params["w_ih"].T + params["b_ih"]
        gh = h @ params["w_hh"].T + params["b_hh"]
        i_r, i_i, i_n = gi[..., :H], gi[..., H:2 * H], gi[..., 2 * H:]
        h_r, h_i, h_n = gh[..., :H], gh[..., H:2 * H], gh[..., 2 * H:]
        rg = jax.nn.sigmoid(i_r + h_r)
        ig = jax.nn.sigmoid(i_i + h_i)
        ng = jnp.tanh(i_n + rg * h_n)
        h = ng + ig * (h - ng)
    return h, time_emb, hidden_avg


# --------------------------------------------------------------------------
# Deterministic parameter init (matches __init__ shapes, uniform(-stdv, stdv))
# --------------------------------------------------------------------------
def init_params(key, n_node, hidden_size, n_time=601):
    stdv = 1.0 / math.sqrt(hidden_size)
    ks = jax.random.split(key, 12)
    u = lambda k, shape: jax.random.uniform(k, shape, jnp.float32, -stdv, stdv)
    return {
        "embedding": u(ks[0], (n_node, hidden_size)),
        "time_embedding": u(ks[1], (n_time, hidden_size)),
        "w_edge_in": u(ks[2], (hidden_size, hidden_size)),
        "b_edge_in": u(ks[3], (hidden_size,)),
        "w_edge_out": u(ks[4], (hidden_size, hidden_size)),
        "b_edge_out": u(ks[5], (hidden_size,)),
        "b_iah": u(ks[6], (hidden_size,)),
        "b_oah": u(ks[7], (hidden_size,)),
        "w_ih": u(ks[8], (3 * hidden_size, 2 * hidden_size)),
        "b_ih": u(ks[9], (3 * hidden_size,)),
        "w_hh": u(ks[10], (3 * hidden_size, hidden_size)),
        "b_hh": u(ks[11], (3 * hidden_size,)),
    }


if __name__ == "__main__":
    B, S, H = 8, 8, 32
    n_node, n_time = 200, 601

    key = jax.random.PRNGKey(0)
    k_p, k_in, k_t, k_a = jax.random.split(key, 4)
    params = init_params(k_p, n_node, H, n_time=n_time)

    inputs = jax.random.randint(k_in, (B, S), 0, n_node, dtype=jnp.int32)
    times = jax.random.randint(k_t, (B, S), 0, n_time, dtype=jnp.int32)
    A = jax.random.uniform(k_a, (B, S, 2 * S), jnp.float32, 0.0, 1.0)

    ref_h, ref_t, ref_avg = _reference_forward(params, inputs, A, times, step=1)

    # f32 path (tight check); auto TB -> 2 grid steps so v7x's 2nd TC has work
    hidden, time_emb, hidden_avg = session_graph_forward(
        params, inputs, A, times, step=1, compute_dtype=jnp.float32)
    jax.block_until_ready((hidden, time_emb, hidden_avg))
    assert hidden.shape == (B, S, H) and time_emb.shape == (B, S, H)
    assert hidden_avg.shape == (B, 1, H)
    assert jnp.allclose(hidden, ref_h, atol=1e-4, rtol=1e-4)
    assert jnp.allclose(time_emb, ref_t, atol=1e-6, rtol=1e-6)
    assert jnp.allclose(hidden_avg, ref_avg, atol=1e-5, rtol=1e-5)

    # multi-step GNN (step=2), f32 path
    h2, _, _ = session_graph_forward(params, inputs, A, times, step=2,
                                     compute_dtype=jnp.float32)
    jax.block_until_ready(h2)
    ref_h2, _, _ = _reference_forward(params, inputs, A, times, step=2)
    assert jnp.allclose(h2, ref_h2, atol=1e-4, rtol=1e-4)

    # default path: bf16 matmul operands, f32 accumulation / gate math
    hb, _, avgb = session_graph_forward(params, inputs, A, times, step=1)
    jax.block_until_ready((hb, avgb))
    assert jnp.allclose(hb, ref_h, atol=5e-2, rtol=5e-2)
    assert jnp.allclose(avgb, ref_avg, atol=1e-5, rtol=1e-5)

    # standalone full-table normalization (only needed later by compute_scores)
    w_norm = normalize_embedding(params["embedding"])
    jax.block_until_ready(w_norm)
    ref_norm = params["embedding"] / jnp.linalg.norm(
        params["embedding"], axis=1, keepdims=True)
    assert jnp.allclose(w_norm, ref_norm, atol=1e-6, rtol=1e-6)

    print("KERNEL_OK")
</pallas_src>

<mosaic_0001>
module attributes {stable_mosaic.version = 11 : i64} {
  func.func @_gnn_kernel(%arg0: i32, %arg1: memref<4x8x8xf32, #tpu.memory_space<vmem>>, %arg2: memref<4x8x8xf32, #tpu.memory_space<vmem>>, %arg3: memref<4x8x128xf32, #tpu.memory_space<vmem>>, %arg4: memref<128x256xf32, #tpu.memory_space<vmem>>, %arg5: memref<256x384xf32, #tpu.memory_space<vmem>>, %arg6: memref<128x384xf32, #tpu.memory_space<vmem>>, %arg7: memref<2x256xf32, #tpu.memory_space<vmem>>, %arg8: memref<2x384xf32, #tpu.memory_space<vmem>>, %arg9: memref<4x8x128xf32, #tpu.memory_space<vmem>>, %arg10: memref<4x1x128xf32, #tpu.memory_space<vmem>>) attributes {dimension_semantics = [#tpu.dimension_semantics<parallel>], iteration_bounds = array<i64: 2>, scalar_prefetch = 0 : i64, scratch_operands = 0 : i64, tpu.core_type = #tpu.core_type<tc>, window_params = [{transform_indices = @transform_0, window_bounds = array<i64: 4, 8, 8>}, {transform_indices = @transform_1, window_bounds = array<i64: 4, 8, 8>}, {transform_indices = @transform_2, window_bounds = array<i64: 4, 8, 128>}, {pipeline_mode = #tpu.pipeline_mode<synchronous>, transform_indices = @transform_3, window_bounds = array<i64: 128, 256>}, {pipeline_mode = #tpu.pipeline_mode<synchronous>, transform_indices = @transform_4, window_bounds = array<i64: 256, 384>}, {pipeline_mode = #tpu.pipeline_mode<synchronous>, transform_indices = @transform_5, window_bounds = array<i64: 128, 384>}, {pipeline_mode = #tpu.pipeline_mode<synchronous>, transform_indices = @transform_6, window_bounds = array<i64: 2, 256>}, {pipeline_mode = #tpu.pipeline_mode<synchronous>, transform_indices = @transform_7, window_bounds = array<i64: 2, 384>}, {transform_indices = @transform_8, window_bounds = array<i64: 4, 8, 128>}, {transform_indices = @transform_9, window_bounds = array<i64: 4, 1, 128>}]} {
    %c0 = arith.constant 0 : index
    %c0_0 = arith.constant 0 : index
    %c0_1 = arith.constant 0 : index
    %0 = vector.load %arg3[%c0, %c0_0, %c0_1] : memref<4x8x128xf32, #tpu.memory_space<vmem>>, vector<4x8x128xf32>
    %1 = arith.mulf %0, %0 : vector<4x8x128xf32>
    %cst = arith.constant dense<0.000000e+00> : vector<4x8xf32>
    %2 = vector.multi_reduction <add>, %1, %cst [2] : vector<4x8x128xf32> to vector<4x8xf32>
    %3 = vector.shape_cast %2 : vector<4x8xf32> to vector<4x8x1xf32>
    %cst_2 = arith.constant 1.000000e-24 : f32
    %4 = vector.broadcast %cst_2 : f32 to vector<4x8x1xf32>
    %5 = arith.maximumf %3, %4 : vector<4x8x1xf32>
    %6 = math.rsqrt %5 : vector<4x8x1xf32>
    %7 = vector.broadcast %6 : vector<4x8x1xf32> to vector<4x8x128xf32>
    %8 = arith.mulf %0, %7 : vector<4x8x128xf32>
    %cst_3 = arith.constant dense<0.000000e+00> : vector<4x128xf32>
    %9 = vector.multi_reduction <add>, %8, %cst_3 [1] : vector<4x8x128xf32> to vector<4x128xf32>
    %10 = vector.shape_cast %9 : vector<4x128xf32> to vector<4x1x128xf32>
    %cst_4 = arith.constant 1.250000e-01 : f32
    %11 = vector.broadcast %cst_4 : f32 to vector<4x1x128xf32>
    %12 = arith.mulf %10, %11 : vector<4x1x128xf32>
    %c0_5 = arith.constant 0 : index
    %c0_6 = arith.constant 0 : index
    %c0_7 = arith.constant 0 : index
    %13 = vector.load %arg10[%c0_5, %c0_6, %c0_7] : memref<4x1x128xf32, #tpu.memory_space<vmem>>, vector<4x1x128xf32>
    tpu.vector_store %arg10[%c0_5, %c0_6, %c0_7], %12 {strides = array<i32>} : memref<4x1x128xf32, #tpu.memory_space<vmem>>, vector<4x1x128xf32>,
    %c0_8 = arith.constant 0 : index
    %c0_9 = arith.constant 0 : index
    %14 = vector.load %arg4[%c0_8, %c0_9] : memref<128x256xf32, #tpu.memory_space<vmem>>, vector<128x256xf32>
    %c0_10 = arith.constant 0 : index
    %c0_11 = arith.constant 0 : index
    %15 = vector.load %arg5[%c0_10, %c0_11] : memref<256x384xf32, #tpu.memory_space<vmem>>, vector<256x384xf32>
    %c0_12 = arith.constant 0 : index
    %c0_13 = arith.constant 0 : index
    %16 = vector.load %arg6[%c0_12, %c0_13] : memref<128x384xf32, #tpu.memory_space<vmem>>, vector<128x384xf32>
    %c0_14 = arith.constant 0 : index
    %c0_15 = arith.constant 0 : index
    %17 = vector.load %arg7[%c0_14, %c0_15] : memref<2x256xf32, #tpu.memory_space<vmem>>, vector<1x256xf32>
    %c1 = arith.constant 1 : index
    %c0_16 = arith.constant 0 : index
    %18 = vector.load %arg7[%c1, %c0_16] : memref<2x256xf32, #tpu.memory_space<vmem>>, vector<1x256xf32>
    %c0_17 = arith.constant 0 : index
    %c0_18 = arith.constant 0 : index
    %19 = vector.load %arg8[%c0_17, %c0_18] : memref<2x384xf32, #tpu.memory_space<vmem>>, vector<1x384xf32>
    %c1_19 = arith.constant 1 : index
    %c0_20 = arith.constant 0 : index
    %20 = vector.load %arg8[%c1_19, %c0_20] : memref<2x384xf32, #tpu.memory_space<vmem>>, vector<1x384xf32>
    %c0_21 = arith.constant 0 : index
    %c0_22 = arith.constant 0 : index
    %c0_23 = arith.constant 0 : index
    %21 = vector.load %arg1[%c0_21, %c0_22, %c0_23] : memref<4x8x8xf32, #tpu.memory_space<vmem>>, vector<4x8x8xf32>
    %c0_24 = arith.constant 0 : index
    %c0_25 = arith.constant 0 : index
    %c0_26 = arith.constant 0 : index
    %22 = vector.load %arg2[%c0_24, %c0_25, %c0_26] : memref<4x8x8xf32, #tpu.memory_space<vmem>>, vector<4x8x8xf32>
    %23 = vector.shape_cast %8 : vector<4x8x128xf32> to vector<32x128xf32>
    %cst_27 = arith.constant dense<0.000000e+00> : vector<32x256xf32>
    %24 = tpu.matmul %23, %14, %cst_27 {dimension_numbers = #tpu.dot_dimension_numbers<[1], [0], [0], [1], [0, 0, 1, 1], [], []>} : vector<32x128xf32>, vector<128x256xf32>, vector<32x256xf32> -> vector<32x256xf32>
    %25 = vector.broadcast %17 : vector<1x256xf32> to vector<32x256xf32>
    %26 = arith.addf %24, %25 : vector<32x256xf32>
    %27 = vector.extract_strided_slice %26 {offsets = [0, 0], sizes = [32, 128], strides = [1, 1]} : vector<32x256xf32> to vector<32x128xf32>
    %28 = vector.shape_cast %27 : vector<32x128xf32> to vector<4x8x128xf32>
    %29 = vector.extract_strided_slice %26 {offsets = [0, 128], sizes = [32, 128], strides = [1, 1]} : vector<32x256xf32> to vector<32x128xf32>
    %30 = vector.shape_cast %29 : vector<32x128xf32> to vector<4x8x128xf32>
    %31 = vector.extract_strided_slice %21 {offsets = [0, 0, 0], sizes = [4, 8, 1], strides = [1, 1, 1]} : vector<4x8x8xf32> to vector<4x8x1xf32>
    %32 = vector.extract_strided_slice %28 {offsets = [0, 0, 0], sizes = [4, 1, 128], strides = [1, 1, 1]} : vector<4x8x128xf32> to vector<4x1x128xf32>
    %33 = vector.broadcast %31 : vector<4x8x1xf32> to vector<4x8x128xf32>
    %34 = vector.broadcast %32 : vector<4x1x128xf32> to vector<4x8x128xf32>
    %35 = arith.mulf %33, %34 : vector<4x8x128xf32>
    %36 = vector.extract_strided_slice %21 {offsets = [0, 0, 1], sizes = [4, 8, 1], strides = [1, 1, 1]} : vector<4x8x8xf32> to vector<4x8x1xf32>
    %37 = vector.extract_strided_slice %28 {offsets = [0, 1, 0], sizes = [4, 1, 128], strides = [1, 1, 1]} : vector<4x8x128xf32> to vector<4x1x128xf32>
    %38 = vector.broadcast %36 : vector<4x8x1xf32> to vector<4x8x128xf32>
    %39 = vector.broadcast %37 : vector<4x1x128xf32> to vector<4x8x128xf32>
    %40 = arith.mulf %38, %39 : vector<4x8x128xf32>
    %41 = arith.addf %35, %40 : vector<4x8x128xf32>
    %42 = vector.extract_strided_slice %21 {offsets = [0, 0, 2], sizes = [4, 8, 1], strides = [1, 1, 1]} : vector<4x8x8xf32> to vector<4x8x1xf32>
    %43 = vector.extract_strided_slice %28 {offsets = [0, 2, 0], sizes = [4, 1, 128], strides = [1, 1, 1]} : vector<4x8x128xf32> to vector<4x1x128xf32>
    %44 = vector.broadcast %42 : vector<4x8x1xf32> to vector<4x8x128xf32>
    %45 = vector.broadcast %43 : vector<4x1x128xf32> to vector<4x8x128xf32>
    %46 = arith.mulf %44, %45 : vector<4x8x128xf32>
    %47 = arith.addf %41, %46 : vector<4x8x128xf32>
    %48 = vector.extract_strided_slice %21 {offsets = [0, 0, 3], sizes = [4, 8, 1], strides = [1, 1, 1]} : vector<4x8x8xf32> to vector<4x8x1xf32>
    %49 = vector.extract_strided_slice %28 {offsets = [0, 3, 0], sizes = [4, 1, 128], strides = [1, 1, 1]} : vector<4x8x128xf32> to vector<4x1x128xf32>
    %50 = vector.broadcast %48 : vector<4x8x1xf32> to vector<4x8x128xf32>
    %51 = vector.broadcast %49 : vector<4x1x128xf32> to vector<4x8x128xf32>
    %52 = arith.mulf %50, %51 : vector<4x8x128xf32>
    %53 = arith.addf %47, %52 : vector<4x8x128xf32>
    %54 = vector.extract_strided_slice %21 {offsets = [0, 0, 4], sizes = [4, 8, 1], strides = [1, 1, 1]} : vector<4x8x8xf32> to vector<4x8x1xf32>
    %55 = vector.extract_strided_slice %28 {offsets = [0, 4, 0], sizes = [4, 1, 128], strides = [1, 1, 1]} : vector<4x8x128xf32> to vector<4x1x128xf32>
    %56 = vector.broadcast %54 : vector<4x8x1xf32> to vector<4x8x128xf32>
    %57 = vector.broadcast %55 : vector<4x1x128xf32> to vector<4x8x128xf32>
    %58 = arith.mulf %56, %57 : vector<4x8x128xf32>
    %59 = arith.addf %53, %58 : vector<4x8x128xf32>
    %60 = vector.extract_strided_slice %21 {offsets = [0, 0, 5], sizes = [4, 8, 1], strides = [1, 1, 1]} : vector<4x8x8xf32> to vector<4x8x1xf32>
    %61 = vector.extract_strided_slice %28 {offsets = [0, 5, 0], sizes = [4, 1, 128], strides = [1, 1, 1]} : vector<4x8x128xf32> to vector<4x1x128xf32>
    %62 = vector.broadcast %60 : vector<4x8x1xf32> to vector<4x8x128xf32>
    %63 = vector.broadcast %61 : vector<4x1x128xf32> to vector<4x8x128xf32>
    %64 = arith.mulf %62, %63 : vector<4x8x128xf32>
    %65 = arith.addf %59, %64 : vector<4x8x128xf32>
    %66 = vector.extract_strided_slice %21 {offsets = [0, 0, 6], sizes = [4, 8, 1], strides = [1, 1, 1]} : vector<4x8x8xf32> to vector<4x8x1xf32>
    %67 = vector.extract_strided_slice %28 {offsets = [0, 6, 0], sizes = [4, 1, 128], strides = [1, 1, 1]} : vector<4x8x128xf32> to vector<4x1x128xf32>
    %68 = vector.broadcast %66 : vector<4x8x1xf32> to vector<4x8x128xf32>
    %69 = vector.broadcast %67 : vector<4x1x128xf32> to vector<4x8x128xf32>
    %70 = arith.mulf %68, %69 : vector<4x8x128xf32>
    %71 = arith.addf %65, %70 : vector<4x8x128xf32>
    %72 = vector.extract_strided_slice %21 {offsets = [0, 0, 7], sizes = [4, 8, 1], strides = [1, 1, 1]} : vector<4x8x8xf32> to vector<4x8x1xf32>
    %73 = vector.extract_strided_slice %28 {offsets = [0, 7, 0], sizes = [4, 1, 128], strides = [1, 1, 1]} : vector<4x8x128xf32> to vector<4x1x128xf32>
    %74 = vector.broadcast %72 : vector<4x8x1xf32> to vector<4x8x128xf32>
    %75 = vector.broadcast %73 : vector<4x1x128xf32> to vector<4x8x128xf32>
    %76 = arith.mulf %74, %75 : vector<4x8x128xf32>
    %77 = arith.addf %71, %76 : vector<4x8x128xf32>
    %78 = vector.extract_strided_slice %22 {offsets = [0, 0, 0], sizes = [4, 8, 1], strides = [1, 1, 1]} : vector<4x8x8xf32> to vector<4x8x1xf32>
    %79 = vector.extract_strided_slice %30 {offsets = [0, 0, 0], sizes = [4, 1, 128], strides = [1, 1, 1]} : vector<4x8x128xf32> to vector<4x1x128xf32>
    %80 = vector.broadcast %78 : vector<4x8x1xf32> to vector<4x8x128xf32>
    %81 = vector.broadcast %79 : vector<4x1x128xf32> to vector<4x8x128xf32>
    %82 = arith.mulf %80, %81 : vector<4x8x128xf32>
    %83 = vector.extract_strided_slice %22 {offsets = [0, 0, 1], sizes = [4, 8, 1], strides = [1, 1, 1]} : vector<4x8x8xf32> to vector<4x8x1xf32>
    %84 = vector.extract_strided_slice %30 {offsets = [0, 1, 0], sizes = [4, 1, 128], strides = [1, 1, 1]} : vector<4x8x128xf32> to vector<4x1x128xf32>
    %85 = vector.broadcast %83 : vector<4x8x1xf32> to vector<4x8x128xf32>
    %86 = vector.broadcast %84 : vector<4x1x128xf32> to vector<4x8x128xf32>
    %87 = arith.mulf %85, %86 : vector<4x8x128xf32>
    %88 = arith.addf %82, %87 : vector<4x8x128xf32>
    %89 = vector.extract_strided_slice %22 {offsets = [0, 0, 2], sizes = [4, 8, 1], strides = [1, 1, 1]} : vector<4x8x8xf32> to vector<4x8x1xf32>
    %90 = vector.extract_strided_slice %30 {offsets = [0, 2, 0], sizes = [4, 1, 128], strides = [1, 1, 1]} : vector<4x8x128xf32> to vector<4x1x128xf32>
    %91 = vector.broadcast %89 : vector<4x8x1xf32> to vector<4x8x128xf32>
    %92 = vector.broadcast %90 : vector<4x1x128xf32> to vector<4x8x128xf32>
    %93 = arith.mulf %91, %92 : vector<4x8x128xf32>
    %94 = arith.addf %88, %93 : vector<4x8x128xf32>
    %95 = vector.extract_strided_slice %22 {offsets = [0, 0, 3], sizes = [4, 8, 1], strides = [1, 1, 1]} : vector<4x8x8xf32> to vector<4x8x1xf32>
    %96 = vector.extract_strided_slice %30 {offsets = [0, 3, 0], sizes = [4, 1, 128], strides = [1, 1, 1]} : vector<4x8x128xf32> to vector<4x1x128xf32>
    %97 = vector.broadcast %95 : vector<4x8x1xf32> to vector<4x8x128xf32>
    %98 = vector.broadcast %96 : vector<4x1x128xf32> to vector<4x8x128xf32>
    %99 = arith.mulf %97, %98 : vector<4x8x128xf32>
    %100 = arith.addf %94, %99 : vector<4x8x128xf32>
    %101 = vector.extract_strided_slice %22 {offsets = [0, 0, 4], sizes = [4, 8, 1], strides = [1, 1, 1]} : vector<4x8x8xf32> to vector<4x8x1xf32>
    %102 = vector.extract_strided_slice %30 {offsets = [0, 4, 0], sizes = [4, 1, 128], strides = [1, 1, 1]} : vector<4x8x128xf32> to vector<4x1x128xf32>
    %103 = vector.broadcast %101 : vector<4x8x1xf32> to vector<4x8x128xf32>
    %104 = vector.broadcast %102 : vector<4x1x128xf32> to vector<4x8x128xf32>
    %105 = arith.mulf %103, %104 : vector<4x8x128xf32>
    %106 = arith.addf %100, %105 : vector<4x8x128xf32>
    %107 = vector.extract_strided_slice %22 {offsets = [0, 0, 5], sizes = [4, 8, 1], strides = [1, 1, 1]} : vector<4x8x8xf32> to vector<4x8x1xf32>
    %108 = vector.extract_strided_slice %30 {offsets = [0, 5, 0], sizes = [4, 1, 128], strides = [1, 1, 1]} : vector<4x8x128xf32> to vector<4x1x128xf32>
    %109 = vector.broadcast %107 : vector<4x8x1xf32> to vector<4x8x128xf32>
    %110 = vector.broadcast %108 : vector<4x1x128xf32> to vector<4x8x128xf32>
    %111 = arith.mulf %109, %110 : vector<4x8x128xf32>
    %112 = arith.addf %106, %111 : vector<4x8x128xf32>
    %113 = vector.extract_strided_slice %22 {offsets = [0, 0, 6], sizes = [4, 8, 1], strides = [1, 1, 1]} : vector<4x8x8xf32> to vector<4x8x1xf32>
    %114 = vector.extract_strided_slice %30 {offsets = [0, 6, 0], sizes = [4, 1, 128], strides = [1, 1, 1]} : vector<4x8x128xf32> to vector<4x1x128xf32>
    %115 = vector.broadcast %113 : vector<4x8x1xf32> to vector<4x8x128xf32>
    %116 = vector.broadcast %114 : vector<4x1x128xf32> to vector<4x8x128xf32>
    %117 = arith.mulf %115, %116 : vector<4x8x128xf32>
    %118 = arith.addf %112, %117 : vector<4x8x128xf32>
    %119 = vector.extract_strided_slice %22 {offsets = [0, 0, 7], sizes = [4, 8, 1], strides = [1, 1, 1]} : vector<4x8x8xf32> to vector<4x8x1xf32>
    %120 = vector.extract_strided_slice %30 {offsets = [0, 7, 0], sizes = [4, 1, 128], strides = [1, 1, 1]} : vector<4x8x128xf32> to vector<4x1x128xf32>
    %121 = vector.broadcast %119 : vector<4x8x1xf32> to vector<4x8x128xf32>
    %122 = vector.broadcast %120 : vector<4x1x128xf32> to vector<4x8x128xf32>
    %123 = arith.mulf %121, %122 : vector<4x8x128xf32>
    %124 = arith.addf %118, %123 : vector<4x8x128xf32>
    %125 = tpu.concatenate %77, %124 in 2 : vector<4x8x128xf32>, vector<4x8x128xf32> -> vector<4x8x256xf32>
    %126 = vector.shape_cast %125 : vector<4x8x256xf32> to vector<32x256xf32>
    %127 = vector.broadcast %18 : vector<1x256xf32> to vector<32x256xf32>
    %128 = arith.addf %126, %127 : vector<32x256xf32>
    %cst_28 = arith.constant dense<0.000000e+00> : vector<32x384xf32>
    %129 = tpu.matmul %128, %15, %cst_28 {dimension_numbers = #tpu.dot_dimension_numbers<[1], [0], [0], [1], [0, 0, 1, 1], [], []>} : vector<32x256xf32>, vector<256x384xf32>, vector<32x384xf32> -> vector<32x384xf32>
    %130 = vector.broadcast %19 : vector<1x384xf32> to vector<32x384xf32>
    %131 = arith.addf %129, %130 : vector<32x384xf32>
    %cst_29 = arith.constant dense<0.000000e+00> : vector<32x384xf32>
    %132 = tpu.matmul %23, %16, %cst_29 {dimension_numbers = #tpu.dot_dimension_numbers<[1], [0], [0], [1], [0, 0, 1, 1], [], []>} : vector<32x128xf32>, vector<128x384xf32>, vector<32x384xf32> -> vector<32x384xf32>
    %133 = vector.broadcast %20 : vector<1x384xf32> to vector<32x384xf32>
    %134 = arith.addf %132, %133 : vector<32x384xf32>
    %135 = vector.extract_strided_slice %131 {offsets = [0, 0], sizes = [32, 128], strides = [1, 1]} : vector<32x384xf32> to vector<32x128xf32>
    %136 = vector.extract_strided_slice %134 {offsets = [0, 0], sizes = [32, 128], strides = [1, 1]} : vector<32x384xf32> to vector<32x128xf32>
    %137 = arith.addf %135, %136 : vector<32x128xf32>
    %138 = arith.negf %137 : vector<32x128xf32>
    %139 = math.exp %138 : vector<32x128xf32>
    %cst_30 = arith.constant 1.000000e+00 : f32
    %140 = vector.broadcast %cst_30 : f32 to vector<32x128xf32>
    %141 = arith.addf %140, %139 : vector<32x128xf32>
    %142 = arith.divf %140, %141 : vector<32x128xf32>
    %143 = vector.extract_strided_slice %131 {offsets = [0, 128], sizes = [32, 128], strides = [1, 1]} : vector<32x384xf32> to vector<32x128xf32>
    %144 = vector.extract_strided_slice %134 {offsets = [0, 128], sizes = [32, 128], strides = [1, 1]} : vector<32x384xf32> to vector<32x128xf32>
    %145 = arith.addf %143, %144 : vector<32x128xf32>
    %146 = arith.negf %145 : vector<32x128xf32>
    %147 = math.exp %146 : vector<32x128xf32>
    %cst_31 = arith.constant 1.000000e+00 : f32
    %148 = vector.broadcast %cst_31 : f32 to vector<32x128xf32>
    %149 = arith.addf %148, %147 : vector<32x128xf32>
    %150 = arith.divf %148, %149 : vector<32x128xf32>
    %151 = vector.extract_strided_slice %131 {offsets = [0, 256], sizes = [32, 128], strides = [1, 1]} : vector<32x384xf32> to vector<32x128xf32>
    %152 = vector.extract_strided_slice %134 {offsets = [0, 256], sizes = [32, 128], strides = [1, 1]} : vector<32x384xf32> to vector<32x128xf32>
    %153 = arith.mulf %142, %152 : vector<32x128xf32>
    %154 = arith.addf %151, %153 : vector<32x128xf32>
    %155 = math.tanh %154 : vector<32x128xf32>
    %156 = arith.subf %23, %155 : vector<32x128xf32>
    %157 = arith.mulf %150, %156 : vector<32x128xf32>
    %158 = arith.addf %155, %157 : vector<32x128xf32>
    %159 = vector.shape_cast %158 : vector<32x128xf32> to vector<4x8x128xf32>
    %c0_32 = arith.constant 0 : index
    %c0_33 = arith.constant 0 : index
    %c0_34 = arith.constant 0 : index
    %160 = vector.load %arg9[%c0_32, %c0_33, %c0_34] : memref<4x8x128xf32, #tpu.memory_space<vmem>>, vector<4x8x128xf32>
    tpu.vector_store %arg9[%c0_32, %c0_33, %c0_34], %159 {strides = array<i32>} : memref<4x8x128xf32, #tpu.memory_space<vmem>>, vector<4x8x128xf32>,
    return
  }
  func.func @transform_0(%arg0: i32) -> (i32, i32, i32) {
    %c0_i32 = arith.constant 0 : i32
    %c0_i32_0 = arith.constant 0 : i32
    %c0_i32_1 = arith.constant 0 : i32
    return %arg0, %c0_i32, %c0_i32_0 : i32, i32, i32
  }
  func.func @transform_1(%arg0: i32) -> (i32, i32, i32) {
    %c0_i32 = arith.constant 0 : i32
    %c0_i32_0 = arith.constant 0 : i32
    %c0_i32_1 = arith.constant 0 : i32
    return %arg0, %c0_i32, %c0_i32_0 : i32, i32, i32
  }
  func.func @transform_2(%arg0: i32) -> (i32, i32, i32) {
    %c0_i32 = arith.constant 0 : i32
    %c0_i32_0 = arith.constant 0 : i32
    %c0_i32_1 = arith.constant 0 : i32
    return %arg0, %c0_i32, %c0_i32_0 : i32, i32, i32
  }
  func.func @transform_3(%arg0: i32) -> (i32, i32) {
    %c0_i32 = arith.constant 0 : i32
    %c0_i32_0 = arith.constant 0 : i32
    %c0_i32_1 = arith.constant 0 : i32
    return %c0_i32, %c0_i32_0 : i32, i32
  }
  func.func @transform_4(%arg0: i32) -> (i32, i32) {
    %c0_i32 = arith.constant 0 : i32
    %c0_i32_0 = arith.constant 0 : i32
    %c0_i32_1 = arith.constant 0 : i32
    return %c0_i32, %c0_i32_0 : i32, i32
  }
  func.func @transform_5(%arg0: i32) -> (i32, i32) {
    %c0_i32 = arith.constant 0 : i32
    %c0_i32_0 = arith.constant 0 : i32
    %c0_i32_1 = arith.constant 0 : i32
    return %c0_i32, %c0_i32_0 : i32, i32
  }
  func.func @transform_6(%arg0: i32) -> (i32, i32) {
    %c0_i32 = arith.constant 0 : i32
    %c0_i32_0 = arith.constant 0 : i32
    %c0_i32_1 = arith.constant 0 : i32
    return %c0_i32, %c0_i32_0 : i32, i32
  }
  func.func @transform_7(%arg0: i32) -> (i32, i32) {
    %c0_i32 = arith.constant 0 : i32
    %c0_i32_0 = arith.constant 0 : i32
    %c0_i32_1 = arith.constant 0 : i32
    return %c0_i32, %c0_i32_0 : i32, i32
  }
  func.func @transform_8(%arg0: i32) -> (i32, i32, i32) {
    %c0_i32 = arith.constant 0 : i32
    %c0_i32_0 = arith.constant 0 : i32
    %c0_i32_1 = arith.constant 0 : i32
    return %arg0, %c0_i32, %c0_i32_0 : i32, i32, i32
  }
  func.func @transform_9(%arg0: i32) -> (i32, i32, i32) {
    %c0_i32 = arith.constant 0 : i32
    %c0_i32_0 = arith.constant 0 : i32
    %c0_i32_1 = arith.constant 0 : i32
    return %arg0, %c0_i32, %c0_i32_0 : i32, i32, i32
  }
}

</mosaic_0001>

<bundles_post_ra>
// kernel: tpu_custom_call.1
= control target key start
LH: loop header
LB: loop body
LE: loop exit
PB: predicated region body
PF: predicated region fallthrough
CT: control target
= control target key end

     0   :  { %s4166_s0 = inlined_call_operand.hbm [shape: f32[8,8,8], index: 0, kind: input, shape index: {}]   ;;  %s4167_s1 = inlined_call_operand.hbm [shape: f32[8,8,8], index: 1, kind: input, shape index: {}]   ;;  %s4168_s2 = inlined_call_operand.hbm [shape: f32[8,8,128], index: 2, kind: input, shape index: {}]   ;;  %s4169_s3 = inlined_call_operand.hbm [shape: f32[128,256], index: 3, kind: input, shape index: {}]   ;;  %s4170_s4 = inlined_call_operand.hbm [shape: f32[256,384], index: 4, kind: input, shape index: {}]   ;;  %s4171_s5 = inlined_call_operand.hbm [shape: f32[128,384], index: 5, kind: input, shape index: {}]   ;;  %s4172_s6 = inlined_call_operand.vmem [shape: f32[2,256], index: 6, kind: input, shape index: {}]   ;;  %s4173_s7 = inlined_call_operand.vmem [shape: f32[2,384], index: 7, kind: input, shape index: {}]   ;;  %s4174_s8 = inlined_call_operand.hbm [shape: f32[8,8,128], index: 8, kind: output, shape index: {0}]   ;;  %s4175_s9 = inlined_call_operand.hbm [shape: f32[8,1,128], index: 9, kind: output, shape index: {1}]  }
   0x1   :  { %4230 = sst [smem:[#allocation69_spill]] %s4167_s1 }
   0x2   :  { %4231 = sst [smem:[#allocation70_spill]] %s4169_s3 }
   0x3   :  { %4232 = sst [smem:[#allocation71_spill]] %s4172_s6 }
   0x4   :  { %4233 = sst [smem:[#allocation72_spill]] %s4173_s7 }
   0x5   :  { %4234 = sst [smem:[#allocation73_spill]] %s4174_s8 }
   0x6   :  { %4235 = sst [smem:[#allocation74_spill]] %s4175_s9 }
   0x7   :  { %15 = vsyncpa [#allocation3], 0 }
   0x8   :  { %17 = vsyncpa [#allocation3 + $0x1], 0 }
   0x9   :  { %18 = vsyncpa [#allocation6], 0 }
   0xa   :  { %20 = vsyncpa [#allocation6 + $0x1], 0 }
   0xb   :  { %21 = vsyncpa [#allocation9], 0 }
   0xc   :  { %22 = vsyncpa [#allocation12], 0 }
   0xd   :  { %23 = vsyncpa [#allocation4], 0 }
   0xe   :  { %25 = vsyncpa [#allocation4 + $0x1], 0 }
   0xf   :  { %26 = vsyncpa [#allocation15], 0 }
  0x10   :  { %28 = vsyncpa [#allocation15 + $0x1], 0  ;;  %s3106_s30 = smov 0   ;;  %s3108_s10 = smov 0  }
  0x11   :  { %s3110_s11 = smov 0   ;;  %s3112_s12 = smov 0  }
  0x12 LB: > { %4236 = sst [smem:[#allocation22_spill]] %s3015_s30  ;;  %s3127_s13 = sadd.s32 4294967295, %s3027_s12   ;;  %s3027_s12 = sphi %s3112_s12, %s4374_s12   ;;  %s3023_s11 = sphi %s3110_s11, %s4378_s11   ;;  %s3019_s10 = sphi %s3108_s10, %s4377_s10   ;;  %s3015_s30 = sphi %s3106_s30, %s4376_s30  }
  0x13   : > { %4237 = sst [smem:[#allocation23_spill]] %s3027_s12  ;;  %s2173_s14 = sadd.s32 4294967294, %s3027_s12  }
  0x14   : > { %s3131_s15 = sadd.s32 1, %s3027_s12   ;;  %s41_s16 = sadd.s32 1, %s3023_s11 }
  0x15   : > { %4238 = sst [smem:[#allocation24_spill]] %s3131_s15  ;;  %s38_s17 = ssub.s32 %s3027_s12, %s3131_s15 }
  0x16   : > { %p48_p0 = scmp.ne.s32.totalorder %s3023_s11, %s3019_s10  ;;  %p39_p1 = scmp.eq.s32.totalorder %s38_s17, 0 }
  0x17   : > { %p49_p2 = scmp.eq.s32.totalorder %s3027_s12, 0  ;;  %p54_p3 = scmp.ne.s32.totalorder %s3019_s10, %s3015_s30 }
  0x18   : > { %p4179_p4 = scmp.eq.s32.totalorder %s3127_s13, 0  ;;  %p235_p7 = scmp.eq.s32.totalorder %s3127_s13, 1 }
  0x19   : > { %s3143_s18 = scalar_select %p39_p1, %s3023_s11, %s41_s16  }
  0x1a   : > { %p3145_p5 = por %p49_p2, %p48_p0  ;;  %p3151_p6 = por %p4179_p4, %p54_p3 }
  0x1b   : > { %4239 = sst [smem:[#allocation25_spill]] %s3143_s18  ;;  %p241_p8 = scmp.eq.s32.totalorder %s2173_s14, 1 }
  0x1c   : > { %s4240_s19 = scalar_select %p3145_p5, 1, 0 }
  0x1d   : > { %s4241_s20 = scalar_select %p3151_p6, 1, 0 }
  0x1e   : > { %p2174_p9 = scmp.ge.s32.totalorder %s3027_s12, 1  ;;  %p274_p10 = scmp.lt.s32.totalorder %s3027_s12, 3 }
  0x1f   : > { %p3158_p11 = por %p235_p7, %p48_p0  ;;  %p3162_p12 = por %p241_p8, %p54_p3 }
  0x20   : > { %p3166_p13 = pnand %p2174_p9, %p274_p10  ;;  %s3029_s24 = smov [#allocation8]  }
  0x21   : > { %s4242_s21 = scalar_select %p3158_p11, 1, 0 }
  0x22   : > { %s4244_s22 = scalar_select %p3162_p12, 1, 0 }
  0x23   : > { %4243 = sst [smem:[#allocation26_spill]] %s4242_s21  ;;  %p2560_p1 = pneg %p3166_p13 }
  0x24   : > { %4245 = sst [smem:[#allocation27_spill]] %s4244_s22  ;;  %s286_s25 = sshll.u32 %s3029_s24, 4  ;;  %s287_s25 = int_to_ptr.vmem [resolvable:$true] %s286_s25 }
  0x25   : > { %s4246_s23 = scalar_select %p3166_p13, 1, 0 }
  0x26   : > { %p3174_p2 = pnand %p2560_p1, %p4179_p4  ;;  %s4178_s27 = sand.u32 1, %s3023_s11  }
  0x27   : > { %s3183_s28 = sshll.u32 %s4178_s27, 5  ;;  %s4248_s3 = sld [smem:[#allocation70_spill]] }
  0x28   : > { %s4247_s26 = scalar_select %p3174_p2, 1, 0 }
  0x29   : > { %p3193_p8 = pneg %p3174_p2 }
  0x2b   : > { %s4249_s24 = scalar_select %p3193_p8, 1, 0 }
  0x2d   : > { %s2743_s16 = scalar_lea.hbm %s4248_s3, 4096 }
  0x2e   : > { %p2744_p7 = scmp.ne.s32.totalorder %s4248_s3, %s2743_s16  ;;  %p2750_p1 = scmp.lt.u32.totalorder %s2743_s16, %s4248_s3 }
  0x30   : > { %p2746_p9 = pnand %p3193_p8, %p2744_p7 }
  0x32   : > { %p2747_p10 = pneg %p2746_p9 }
  0x34   : > { %p2752_p0 = pnand %p2750_p1, %p2747_p10 }
  0x36   : > { %2755 = shalt.err (!%p2752_p0)
}
  0x37   : > { %s2756_s29 = scalar_lea.vmem %s287_s25, 4096  ;;  %p2764_p11 = scmp.lt.s32.totalorder %s287_s25, %s287_s25 }
  0x38   : > { %p2757_p4 = scmp.ne.s32.totalorder %s287_s25, %s2756_s29  ;;  %p2765_p6 = scmp.lt.s32.totalorder %s2756_s29, %s2756_s29 }
  0x3a   : > { %p2759_p3 = pnand %p2757_p4, %p3193_p8  ;;  %p2766_p13 = por %p2765_p6, %p2764_p11 }
  0x3c   : > { %p2760_p12 = pneg %p2759_p3 }
  0x3e   : > { %p2767_p5 = pnand %p2766_p13, %p2760_p12 }
  0x40   : > { %2770 = shalt.err (!%p2767_p5)
}
  0x41   : > { %s3030_s18 = smov 256   ;;  %s3031_s15 = smov 16  }
  0x42   : > { %2563 = dma.hbm_to_vmem [thread:$0]  (!%p3174_p2), %s4248_s3, 4096, %s287_s25, [#allocation9], %s3030_s18, %s3030_s18, %s3031_s15  }
  0x43   : > { %s3210_s16 = sshll.u32 %s3027_s12, 9  ;;  %p4250_p4 = scmp.ne.s32.totalorder %s4240_s19, 0 }
  0x44   : > { %p4251_p0 = scmp.lt.s32.totalorder %s3027_s12, 2  ;;  %s353_s29 = sand.u32 1, %s3027_s12  }
  0x45   : > { %s4253_s1 = sld [smem:[#allocation69_spill]]  ;;  %s357_s25 = scalar_lea.vmem [#allocation5], %s3183_s28 }
  0x46   : > { %p3216_p6 = pnand %p4251_p0, %p4250_p4  ;;  %s364_s18 = sshll.u32 %s357_s25, 4  ;;  %s3228_s18 = int_to_ptr.vmem [resolvable:$true] %s364_s18 }
  0x47   : > { %s3230_s19 = scalar_lea.sflag [#allocation6], %s353_s29 }
  0x48   : > { %s4252_s17 = scalar_select %p3216_p6, 1, 0 }
  0x49   : > { %p3236_p11 = pneg %p3216_p6 }
  0x4b   : > { %s3225_s8 = scalar_lea.hbm %s4253_s1, %s3210_s16  ;;  %s2776_s14 = scalar_lea.hbm %s4253_s1, 1024 }
  0x4c   : > { %s2771_s15 = scalar_lea.hbm %s3225_s8, 512  ;;  %p2777_p3 = scmp.lt.u32.totalorder %s3225_s8, %s4253_s1 }
  0x4d   : > { %p2772_p5 = scmp.ne.s32.totalorder %s3225_s8, %s2771_s15  ;;  %p2778_p7 = scmp.lt.u32.totalorder %s2776_s14, %s2771_s15 }
  0x4e   : > { %s4254_s27 = scalar_select %p3236_p11, 1, 0 }
  0x4f   : > { %p2774_p12 = pnand %p3236_p11, %p2772_p5  ;;  %p2779_p9 = por %p2778_p7, %p2777_p3 }
  0x50   : > { %p2780_p10 = scmp.lt.u32.totalorder %s2771_s15, %s3225_s8 }
  0x51   : > { %p2775_p13 = pneg %p2774_p12 }
  0x52   : > { %p2781_p1 = por %p2780_p10, %p2779_p9 }
  0x54   : > { %p2782_p4 = pnand %p2781_p1, %p2775_p13 }
  0x56   : > { %2785 = shalt.err (!%p2782_p4)
}
  0x57   : > { %s2786_s29 = scalar_lea.vmem %s3228_s18, 512  ;;  %s3032_s30 = smov [#allocation5]  }
  0x58   : > { %p2787_p0 = scmp.ne.s32.totalorder %s3228_s18, %s2786_s29  ;;  %s2791_s22 = sshll.u32 %s3032_s30, 4  ;;  %s2792_s22 = int_to_ptr.vmem [resolvable:$false] %s2791_s22 }
  0x59   : > { %s2793_s3 = scalar_lea.vmem %s2792_s22, 1024  ;;  %p2794_p2 = scmp.lt.s32.totalorder %s3228_s18, %s2792_s22 }
  0x5a   : > { %p2789_p5 = pnand %p2787_p0, %p3236_p11  ;;  %p2795_p8 = scmp.lt.s32.totalorder %s2793_s3, %s2786_s29 }
  0x5c   : > { %p2790_p12 = pneg %p2789_p5  ;;  %p2796_p3 = por %p2795_p8, %p2794_p2 }
  0x5e   : > { %p2797_p7 = pnand %p2796_p3, %p2790_p12 }
  0x60   : > { %2800 = shalt.err (!%p2797_p7)
}
  0x61   : > { %s4195_s15 = smov 128   ;;  %s4197_s14 = smov 8  }
  0x62   : > { %2576 = dma.hbm_to_vmem [thread:$0]  (!%p3216_p6), %s3225_s8, 512, %s3228_s18, %s3230_s19, %s4195_s15, %s4195_s15, %s4197_s14  }
  0x63   : > { %s3035_s25 = smov [#allocation10]   ;;  %s2801_s3 = scalar_lea.hbm %s4170_s4, 12288 }
  0x64   : > { %s299_s30 = sshll.u32 %s3035_s25, 4  ;;  %p2802_p2 = scmp.ne.s32.totalorder %s4170_s4, %s2801_s3  ;;  %s300_s30 = int_to_ptr.vmem [resolvable:$true] %s299_s30 }
  0x65   : > { %p4255_p8 = scmp.ne.s32.totalorder %s4249_s24, 0  ;;  %p2808_p10 = scmp.lt.u32.totalorder %s2801_s3, %s4170_s4 }
  0x67   : > { %p2804_p13 = pnand %p2802_p2, %p4255_p8 }
  0x69   : > { %p2805_p9 = pneg %p2804_p13 }
  0x6b   : > { %p2810_p1 = pnand %p2808_p10, %p2805_p9 }
  0x6d   : > { %2813 = shalt.err (!%p2810_p1)
}
  0x6e   : > { %s2814_s8 = scalar_lea.vmem %s300_s30, 12288  ;;  %p2822_p12 = scmp.lt.s32.totalorder %s300_s30, %s300_s30 }
  0x6f   : > { %p2815_p4 = scmp.ne.s32.totalorder %s300_s30, %s2814_s8  ;;  %p2823_p3 = scmp.lt.s32.totalorder %s2814_s8, %s2814_s8 }
  0x71   : > { %p2817_p0 = pnand %p2815_p4, %p4255_p8  ;;  %p2824_p7 = por %p2823_p3, %p2822_p12 }
  0x73   : > { %p2818_p5 = pneg %p2817_p0 }
  0x75   : > { %p2825_p6 = pnand %p2824_p7, %p2818_p5 }
  0x77   : > { %2828 = shalt.err (!%p2825_p6)
}
  0x78   : > { %s3036_s1 = smov 384   ;;  %s3037_s12 = smov 24  }
  0x79   : > { %p4256_p2 = scmp.ne.s32.totalorder %s4247_s26, 0  ;;  %s3038_s18 = smov [#allocation11]  }
  0x7a   : > { %s312_s25 = sshll.u32 %s3038_s18, 4  ;;  %s3285_s3 = scalar_lea.hbm %s4166_s0, %s3210_s16  ;;  %s313_s25 = int_to_ptr.vmem [resolvable:$true] %s312_s25 }
  0x7b   : > { %2566 = dma.hbm_to_vmem [thread:$0]  (!%p4256_p2), %s4170_s4, 12288, %s300_s30, [#allocation9], %s3036_s1, %s3036_s1, %s3037_s12  }
  0x7c   : > { %s2829_s14 = scalar_lea.hbm %s4171_s5, 6144 }
  0x7d   : > { %p2830_p6 = scmp.ne.s32.totalorder %s4171_s5, %s2829_s14  ;;  %p2836_p10 = scmp.lt.u32.totalorder %s2829_s14, %s4171_s5 }
  0x7f   : > { %p2832_p13 = pnand %p2830_p6, %p4255_p8 }
  0x81   : > { %p2833_p9 = pneg %p2832_p13 }
  0x83   : > { %p2838_p1 = pnand %p2836_p10, %p2833_p9 }
  0x85   : > { %2841 = shalt.err (!%p2838_p1)
}
  0x86   : > { %s2842_s9 = scalar_lea.vmem %s313_s25, 6144  ;;  %p2850_p12 = scmp.lt.s32.totalorder %s313_s25, %s313_s25 }
  0x87   : > { %p2843_p4 = scmp.ne.s32.totalorder %s313_s25, %s2842_s9  ;;  %p2851_p3 = scmp.lt.s32.totalorder %s2842_s9, %s2842_s9 }
  0x89   : > { %p2845_p0 = pnand %p2843_p4, %p4255_p8  ;;  %p2852_p7 = por %p2851_p3, %p2850_p12 }
  0x8b   : > { %p2846_p5 = pneg %p2845_p0 }
  0x8d   : > { %p2853_p11 = pnand %p2852_p7, %p2846_p5 }
  0x8f   : > { %2856 = shalt.err (!%p2853_p11)
}
  0x90   : > { %2569 = dma.hbm_to_vmem [thread:$0]  (!%p4256_p2), %s4171_s5, 6144, %s313_s25, [#allocation12], %s3036_s1, %s3036_s1, %s3037_s12  }
  0x91   : > { %s336_s24 = scalar_lea.vmem [#allocation2], %s3183_s28  ;;  %s3312_s26 = scalar_lea.hbm %s4168_s2, %s3210_s16 }
  0x92   : > { %s343_s15 = sshll.u32 %s336_s24, 4  ;;  %s4257_s22 = sand.u32 1, %s3023_s11   ;;  %s3306_s15 = int_to_ptr.vmem [resolvable:$true] %s343_s15 }
  0x93   : > { %s3316_s29 = scalar_lea.sflag [#allocation3], %s4257_s22  ;;  %s2857_s8 = scalar_lea.hbm %s3285_s3, 512 }
  0x94   : > { %p2858_p11 = scmp.ne.s32.totalorder %s3285_s3, %s2857_s8  ;;  %p4258_p8 = scmp.ne.s32.totalorder %s4254_s27, 0 }
  0x95   : > { %s2862_s1 = scalar_lea.hbm %s4166_s0, 1024  ;;  %p2863_p2 = scmp.lt.u32.totalorder %s3285_s3, %s4166_s0 }
  0x96   : > { %p2860_p6 = pnand %p2858_p11, %p4258_p8  ;;  %p2864_p9 = scmp.lt.u32.totalorder %s2862_s1, %s2857_s8 }
  0x97   : > { %p2866_p1 = scmp.lt.u32.totalorder %s2857_s8, %s3285_s3 }
  0x98   : > { %p2861_p13 = pneg %p2860_p6  ;;  %p2865_p10 = por %p2864_p9, %p2863_p2 }
  0x9a   : > { %p2867_p4 = por %p2866_p1, %p2865_p10 }
  0x9c   : > { %p2868_p0 = pnand %p2867_p4, %p2861_p13 }
  0x9e   : > { %2871 = shalt.err (!%p2868_p0)
}
  0x9f   : > { %s2872_s16 = scalar_lea.vmem %s3306_s15, 512  ;;  %s3039_s9 = smov [#allocation2]  }
  0xa0   : > { %p2873_p5 = scmp.ne.s32.totalorder %s3306_s15, %s2872_s16  ;;  %s2877_s6 = sshll.u32 %s3039_s9, 4  ;;  %s2878_s6 = int_to_ptr.vmem [resolvable:$false] %s2877_s6 }
  0xa1   : > { %s2879_s21 = scalar_lea.vmem %s2878_s6, 1024  ;;  %p2880_p7 = scmp.lt.s32.totalorder %s3306_s15, %s2878_s6 }
  0xa2   : > { %p2875_p12 = pnand %p2873_p5, %p4258_p8  ;;  %p2881_p11 = scmp.lt.s32.totalorder %s2879_s21, %s2872_s16 }
  0xa4   : > { %p2876_p3 = pneg %p2875_p12  ;;  %p2882_p6 = por %p2881_p11, %p2880_p7 }
  0xa6   : > { %p2883_p2 = pnand %p2882_p6, %p2876_p3 }
  0xa8   : > { %2886 = shalt.err (!%p2883_p2)
}
  0xa9   : > { %p4259_p13 = scmp.ne.s32.totalorder %s4252_s17, 0  ;;  %s4260_s24 = smov 8  }
  0xaa   : > { %s4261_s14 = smov 128   ;;  %s378_s18 = scalar_lea.vmem [#allocation7], %s3183_s28 }
  0xab   : > { %2573 = dma.hbm_to_vmem [thread:$0]  (!%p4259_p13), %s3285_s3, 512, %s3306_s15, %s3316_s29, %s4261_s14, %s4261_s14, %s4260_s24  }
  0xac   : > { %s385_s22 = sshll.u32 %s378_s18, 4  ;;  %s2887_s8 = scalar_lea.hbm %s3312_s26, 512  ;;  %s3344_s22 = int_to_ptr.vmem [resolvable:$true] %s385_s22 }
  0xad   : > { %p2888_p9 = scmp.ne.s32.totalorder %s3312_s26, %s2887_s8  ;;  %s2892_s1 = scalar_lea.hbm %s4168_s2, 1024 }
  0xae   : > { %p2893_p4 = scmp.lt.u32.totalorder %s3312_s26, %s4168_s2  ;;  %p2894_p0 = scmp.lt.u32.totalorder %s2892_s1, %s2887_s8 }
  0xaf   : > { %p2890_p10 = pnand %p2888_p9, %p4258_p8  ;;  %p2896_p12 = scmp.lt.u32.totalorder %s2887_s8, %s3312_s26 }
  0xb0   : > { %p2895_p5 = por %p2894_p0, %p2893_p4 }
  0xb1   : > { %p2891_p1 = pneg %p2890_p10 }
  0xb2   : > { %p2897_p3 = por %p2896_p12, %p2895_p5 }
  0xb4   : > { %p2898_p7 = pnand %p2897_p3, %p2891_p1 }
  0xb6   : > { %2901 = shalt.err (!%p2898_p7)
}
  0xb7   : > { %s2902_s28 = scalar_lea.vmem %s3344_s22, 512  ;;  %s3040_s3 = smov [#allocation7]  }
  0xb8   : > { %p2903_p11 = scmp.ne.s32.totalorder %s3344_s22, %s2902_s28  ;;  %s2907_s15 = sshll.u32 %s3040_s3, 4  ;;  %s2908_s15 = int_to_ptr.vmem [resolvable:$false] %s2907_s15 }
  0xb9   : > { %s2909_s29 = scalar_lea.vmem %s2908_s15, 1024  ;;  %p2910_p9 = scmp.lt.s32.totalorder %s3344_s22, %s2908_s15 }
  0xba   : > { %p2905_p6 = pnand %p2903_p11, %p4258_p8  ;;  %p2911_p10 = scmp.lt.s32.totalorder %s2909_s29, %s2902_s28 }
  0xbc   : > { %p2906_p2 = pneg %p2905_p6  ;;  %p2912_p4 = por %p2911_p10, %p2910_p9 }
  0xbe   : > { %p2913_p0 = pnand %p2912_p4, %p2906_p2 }
  0xc0   : > { %2916 = shalt.err (!%p2913_p0)
}
  0xc1   : > { %2579 = dma.hbm_to_vmem [thread:$0]  (!%p4259_p13), %s3312_s26, 512, %s3344_s22, %s3230_s19, %s4261_s14, %s4261_s14, %s4260_s24  }
  0xc2   : > { %p4262_p8 = scmp.ne.s32.totalorder %s4246_s23, 0 }
  0xc4   : > { %397 = sbr.rel (%p4262_p8) target bundleno = 964 (0x3c4), region = 52 }
  0xcb   : > { %s3374_s27 = sand.u32 1, %s3019_s10   ;;  %p4263_p1 = scmp.ne.s32.totalorder %s4241_s20, 0 }
  0xcc   : > { %s3377_s16 = sshll.u32 %s3374_s27, 5  ;;  %s400_s17 = scalar_lea.sflag [#allocation3], %s3374_s27 }
  0xcd   : > { %s3381_s9 = scalar_lea.vmem [#allocation2], %s3377_s16 }
  0xce   : > { %2990 = dma.done.wait (%p4263_p1), %s400_s17, 512  }
  0xcf   : > { %2992 = vsyncadd (%p4263_p1), %s400_s17, 4294966784  ;;  %s408_s23 = sand.u32 1, %s3127_s13   ;;  %s3389_s26 = scalar_lea.vmem [#allocation5], %s3377_s16 }
  0xd0   : > { %s409_s19 = scalar_lea.sflag [#allocation6], %s408_s23 }
  0xd1   : > { %2994 = dma.done.wait (%p4263_p1), %s409_s19, 1024  }
  0xd2   : > { %2996 = vsyncadd (%p4263_p1), %s409_s19, 4294966272  ;;  %s421_s6 = scalar_lea.vmem [#allocation7], %s3377_s16  ;;  %p4264_p13 = scmp.eq.s32.totalorder %s3127_s13, 0 }
  0xd4   : > { %2998 = dma.done.wait (%p4264_p13), [#allocation9], 16384   ;;  %p4265_p5 = pmov %p4264_p13 }
  0xd6   : > { %3000 = vsyncadd (%p4265_p5), [#allocation9], 4294950912  ;;  %p4266_p12 = pmov %p4265_p5 }
  0xd7   : > { %p4267_p3 = pmov %p4265_p5 }
  0xd8   : > { %3002 = dma.done.wait (%p4266_p12), [#allocation12], 6144  }
  0xd9   : > { %3004 = vsyncadd (%p4267_p3), [#allocation12], 4294961152  ;;  %v3041_v0 = vmov 1   ;;  %v3042_v1 = vmov 6   ;;  %v3406_v2 = vld [vmem:[%s421_s6] sm:$0xff]  ;;  %v3408_v3 = vld [vmem:[%s421_s6 + $0x8] sm:$0xff] }
  0xda   : > { %2649 = vset.pattern.permute.xlu1 %v3041_v0  ;;  %2656 = vset.pattern.permute.xlu0 %v3042_v1  ;;  %v3410_v4 = vld [vmem:[%s421_s6 + $0x10] sm:$0xff]  ;;  %v492_v5 = vmul.f32 %v3406_v2, %v3406_v2  ;;  %v3416_v7 = vld [vmem:[%s421_s6 + $0x18] sm:$0xff]  ;;  %v549_v8 = vld [vmem:[#allocation8 + $0x8] sm:$0xff]  ;;  %v493_v10 = vmul.f32 %v3408_v3, %v3408_v3  ;;  %v3043_v59 = vmov 0   ;;  %v4204_v61 = vmov 0.0   ;;  %s2196_s20 = sshll.u32 %s3374_s27, 2 }
  0xdb   : > { %v494_v6 = vmul.f32 %v3410_v4, %v3410_v4  ;;  %v551_v9 = vld [vmem:[#allocation8 + $0x18] sm:$0xff]  ;;  %v495_v11 = vmul.f32 %v3416_v7, %v3416_v7  ;;  %v548_v13 = vld [vmem:[#allocation8] sm:$0xff]  ;;  %v550_v14 = vld [vmem:[#allocation8 + $0x10] sm:$0xff]  ;;  %813 = vmatprep.mubr.f32.mxu0 %v4204_v61  ;;  %v3045_v62 = vmov 7   ;;  %v3046_v63 = vmov 2   ;;  %s3555_s21 = scalar_lea.vmem [#allocation14], %s2196_s20 }
  0xdc   : > { %496 = vadd.xlane.f32.xlu0 %v492_v5  ;;  %v2322_v12 = vpack.c.bf16 %v551_v9, %v549_v8  ;;  %v553_v15 = vld [vmem:[#allocation8 + $0x28] sm:$0xff]  ;;  %v2324_v16 = vpack.c.bf16 %v550_v14, %v548_v13  ;;  %v555_v17 = vld [vmem:[#allocation8 + $0x38] sm:$0xff]  ;;  %v552_v18 = vld [vmem:[#allocation8 + $0x20] sm:$0xff]  ;;  %v3048_v9 = vmov 4   ;;  %s4293_s18 = sld [smem:[#allocation71_spill]]  ;;  %s2219_s7 = sshll.u32 %s3127_s13, 6 }
  0xdd   : > { %500 = vadd.xlane.f32.xlu1 %v494_v6  ;;  %v554_v19 = vld [vmem:[#allocation8 + $0x30] sm:$0xff]  ;;  %v2326_v20 = vpack.c.bf16 %v555_v17, %v553_v15  ;;  %v557_v21 = vld [vmem:[#allocation8 + $0x48] sm:$0xff]  ;;  %v559_v22 = vld [vmem:[#allocation8 + $0x58] sm:$0xff]  ;;  %v3047_v6 = vmov 3   ;;  %s4362_s30 = sld [smem:[#allocation26_spill]]  ;;  %s1996_s1 = sshll.u32 %s3555_s21, 4  ;;  %s4058_s1 = int_to_ptr.vmem [resolvable:$true] %s1996_s1 }
  0xde   : > { %2323 = vmatprep.subr.bf16.mxu0 %v2322_v12  ;;  %v2328_v23 = vpack.c.bf16 %v554_v19, %v552_v18  ;;  %v2330_v24 = vpack.c.bf16 %v559_v22, %v557_v21  ;;  %v556_v25 = vld [vmem:[#allocation8 + $0x40] sm:$0xff]  ;;  %v558_v26 = vld [vmem:[#allocation8 + $0x50] sm:$0xff]  ;;  %v561_v27 = vld [vmem:[#allocation8 + $0x68] sm:$0xff]  ;;  %s4364_s28 = sld [smem:[#allocation74_spill]]  ;;  %s1967_s15 = scalar_lea.sflag [#allocation15], %s3374_s27 }
  0xdf   : > { %2325 = vmatpush1.bf16.msra.mxu0 %v2324_v16  ;;  %v563_v28 = vld [vmem:[#allocation8 + $0x78] sm:$0xff]  ;;  %v2332_v29 = vpack.c.bf16 %v558_v26, %v556_v25  ;;  %v560_v31 = vld [vmem:[#allocation8 + $0x60] sm:$0xff]  ;;  %v562_v32 = vld [vmem:[#allocation8 + $0x70] sm:$0xff]  ;;  %s2917_s29 = scalar_lea.vmem %s4058_s1, 64  ;;  %s3050_s17 = smov [#allocation14]  }
  0xe0   : > { %498 = vadd.xlane.f32.xlu0 %v493_v10  ;;  %2327 = vmatprep.subr.bf16.mxu0 %v2326_v20  ;;  %v2334_v30 = vpack.c.bf16 %v563_v28, %v561_v27  ;;  %v565_v33 = vld [vmem:[#allocation8 + $0x88] sm:$0xff]  ;;  %v567_v34 = vld [vmem:[#allocation8 + $0x98] sm:$0xff]  ;;  %v2336_v35 = vpack.c.bf16 %v562_v32, %v560_v31  ;;  %v564_v37 = vld [vmem:[#allocation8 + $0x80] sm:$0xff]  ;;  %p2918_p7 = scmp.ne.s32.totalorder %s4058_s1, %s2917_s29 }
  0xe1   : > { %502 = vadd.xlane.f32.xlu1 %v495_v11  ;;  %v2338_v36 = vpack.c.bf16 %v567_v34, %v565_v33  ;;  %v566_v38 = vld [vmem:[#allocation8 + $0x90] sm:$0xff]  ;;  %v569_v39 = vld [vmem:[#allocation8 + $0xa8] sm:$0xff]  ;;  %v571_v40 = vld [vmem:[#allocation8 + $0xb8] sm:$0xff]  ;;  %v3049_v11 = vmov 5  }
  0xe2   : > { %v2340_v41 = vpack.c.bf16 %v566_v38, %v564_v37  ;;  %v2342_v42 = vpack.c.bf16 %v571_v40, %v569_v39  ;;  %v568_v43 = vld [vmem:[#allocation8 + $0xa0] sm:$0xff]  ;;  %v570_v44 = vld [vmem:[#allocation8 + $0xb0] sm:$0xff]  ;;  %v573_v46 = vld [vmem:[#allocation8 + $0xc8] sm:$0xff] }
  0xe3   : > { %2329 = vmatpush1.bf16.msra.mxu0 %v2328_v23  ;;  %v3423_v45 = vld [vmem:[%s3389_s26] sm:$0xff]  ;;  %v575_v47 = vld [vmem:[#allocation8 + $0xd8] sm:$0xff]  ;;  %v2344_v48 = vpack.c.bf16 %v570_v44, %v568_v43  ;;  %v574_v51 = vld [vmem:[#allocation8 + $0xd0] sm:$0xff]  ;;  %p4365_p11 = scmp.ne.s32.totalorder %s4362_s30, 0 }
  0xe4   : > { %2331 = vmatprep.subr.bf16.mxu0 %v2330_v24  ;;  %v2346_v49 = vpack.c.bf16 %v575_v47, %v573_v46  ;;  %v572_v50 = vld [vmem:[#allocation8 + $0xc0] sm:$0xff]  ;;  %v577_v52 = vld [vmem:[#allocation8 + $0xe8] sm:$0xff]  ;;  %v579_v53 = vld [vmem:[#allocation8 + $0xf8] sm:$0xff]  ;;  %s4056_s3 = scalar_lea.hbm %s4364_s28, %s2219_s7 }
  0xe5   : > { %v730_v54 = vld [vmem:[%s3381_s9] sm:$0xff]  ;;  %v2348_v55 = vpack.c.bf16 %v574_v51, %v572_v50  ;;  %v2350_v56 = vpack.c.bf16 %v579_v53, %v577_v52  ;;  %v578_v58 = vld [vmem:[#allocation8 + $0xf0] sm:$0xff]  ;;  %v3435_v5 = vld [vmem:[%s3381_s9 + $0x8] sm:$0xff]  ;;  %p2919_p6 = pnand %p2918_p7, %p4365_p11 }
  0xe6   : > { %v576_v57 = vld [vmem:[#allocation8 + $0xe0] sm:$0xff]  ;;  %v3445_v8 = vld [vmem:[%s3389_s26 + $0x18] sm:$0xff]  ;;  %v3451_v10 = vld [vmem:[%s3389_s26 + $0x8] sm:$0xff] }
  0xe7   : > { %2333 = vmatpush1.bf16.msra.mxu0 %v2332_v29  ;;  %v2352_v60 = vpack.c.bf16 %v578_v58, %v576_v57  ;;  %v3462_v12 = vld [vmem:[%s3381_s9 + $0x10] sm:$0xff]  ;;  %v3469_v13 = vld [vmem:[%s3381_s9 + $0x18] sm:$0xff]  ;;  %v581_v15 = vld [vmem:[#allocation10 + $0x8] sm:$0xff]  ;;  %p2920_p2 = pneg %p2919_p6  ;;  %s2921_s9 = sshll.u32 %s3050_s17, 4  ;;  %s2922_s9 = int_to_ptr.vmem [resolvable:$false] %s2921_s9 }
  0xe8   : > { %2335 = vmatprep.subr.bf16.mxu0 %v2334_v30  ;;  %v3480_v14 = vld [vmem:[%s3389_s26 + $0x10] sm:$0xff]  ;;  %v584_v16 = vld [vmem:[#allocation10 + $0x20] sm:$0xff]  ;;  %v583_v19 = vld [vmem:[#allocation10 + $0x18] sm:$0xff]  ;;  %s2923_s23 = scalar_lea.vmem %s2922_s9, 128  ;;  %p2924_p9 = scmp.lt.s32.totalorder %s4058_s1, %s2922_s9 }
  0xe9   : > { %v580_v17 = vld [vmem:[#allocation10] sm:$0xff]  ;;  %v2354_v18 = vpack.c.bf16 %v584_v16, %v581_v15  ;;  %v587_v21 = vld [vmem:[#allocation10 + $0x38] sm:$0xff]  ;;  %v590_v22 = vld [vmem:[#allocation10 + $0x50] sm:$0xff]  ;;  %p2925_p10 = scmp.lt.s32.totalorder %s2923_s23, %s2917_s29 }
  0xea   : > { %v2356_v20 = vpack.c.bf16 %v583_v19, %v580_v17  ;;  %v586_v23 = vld [vmem:[#allocation10 + $0x30] sm:$0xff]  ;;  %v2358_v26 = vpack.c.bf16 %v590_v22, %v587_v21  ;;  %v589_v27 = vld [vmem:[#allocation10 + $0x48] sm:$0xff]  ;;  %v596_v34 = vld [vmem:[#allocation10 + $0x80] sm:$0xff] }
  0xeb   : > { %2337 = vmatpush1.bf16.msra.mxu0 %v2336_v35  ;;  %2355 = vmatprep.subr.bf16.mxu1 %v2354_v18  ;;  %v2360_v30 = vpack.c.bf16 %v589_v27, %v586_v23  ;;  %v593_v33 = vld [vmem:[#allocation10 + $0x68] sm:$0xff]  ;;  %v592_v35 = vld [vmem:[#allocation10 + $0x60] sm:$0xff]  ;;  %v595_v39 = vld [vmem:[#allocation10 + $0x78] sm:$0xff]  ;;  %p2926_p4 = por %p2925_p10, %p2924_p9 }
  0xec   : > { %2339 = vmatprep.subr.bf16.mxu0 %v2338_v36  ;;  %2357 = vmatpush1.bf16.msra.mxu1 %v2356_v20  ;;  %v2362_v38 = vpack.c.bf16 %v596_v34, %v593_v33  ;;  %v2364_v40 = vpack.c.bf16 %v595_v39, %v592_v35  ;;  %v598_v43 = vld [vmem:[#allocation10 + $0x90] sm:$0xff]  ;;  %v601_v44 = vld [vmem:[#allocation10 + $0xa8] sm:$0xff]  ;;  %v608_v50 = vld [vmem:[#allocation10 + $0xe0] sm:$0xff] }
  0xed   : > { %2359 = vmatprep.subr.bf16.mxu1 %v2358_v26  ;;  %v604_v51 = vld [vmem:[#allocation10 + $0xc0] sm:$0xff]  ;;  %v611_v15 = vld [vmem:[#allocation10 + $0xf8] sm:$0xff]  ;;  %v614_v16 = vld [vmem:[#allocation10 + $0x110] sm:$0xff]  ;;  %p2927_p0 = pnand %p2926_p4, %p2920_p2 }
  0xee   : > { %v610_v17 = vld [vmem:[#allocation10 + $0xf0] sm:$0xff]  ;;  %v613_v20 = vld [vmem:[#allocation10 + $0x108] sm:$0xff]  ;;  %v619_v34 = vld [vmem:[#allocation10 + $0x138] sm:$0xff] }
  0xef   : > { %2341 = vmatpush1.bf16.msra.mxu0 %v2340_v41  ;;  %v599_v41 = vld [vmem:[#allocation10 + $0x98] sm:$0xff] }
  0xf0   : > { %2343 = vmatprep.subr.bf16.mxu0 %v2342_v42  ;;  %2361 = vmatpush1.bf16.msra.mxu1 %v2360_v30  ;;  %v602_v42 = vld [vmem:[#allocation10 + $0xb0] sm:$0xff]  ;;  %v616_v30 = vld [vmem:[#allocation10 + $0x120] sm:$0xff] }
  0xf1   : > { %2363 = vmatprep.subr.bf16.mxu1 %v2362_v38 }
  0xf2   : > { %1199 = vperm.xlu1 %2649, %v3423_v45  }
  0xf3   : > { %2345 = vmatpush1.bf16.msra.mxu0 %v2344_v48 }
  0xf4   : > { %2347 = vmatprep.subr.bf16.mxu0 %v2346_v49  ;;  %2365 = vmatpush1.bf16.msra.mxu1 %v2364_v40  ;;  %v605_v49 = vld [vmem:[#allocation10 + $0xc8] sm:$0xff] }
  0xf5   : > { %v2370_v53 = vpack.c.bf16 %v608_v50, %v605_v49  ;;  %v625_v49 = vld [vmem:[#allocation10 + $0x168] sm:$0xff] }
  0xf6   : > { %2650 = vset.pattern.permute.xlu1 %v3043_v59  ;;  %1399 = vperm.xlu0 %2656, %v3423_v45  }
  0xf7   : > { %840 = vperm.xlu1 %2650, %v730_v54   ;;  %2349 = vmatpush1.bf16.msra.mxu0 %v2348_v55 }
  0xf8   : > { %2351 = vmatprep.subr.bf16.mxu0 %v2350_v56 }
  0xfa   : > { %2659 = vset.pattern.permute.xlu0 %v3045_v62 }
  0xfb   : > { %2651 = vset.pattern.permute.xlu1 %v3041_v0  ;;  %2353 = vmatpush1.bf16.msra.mxu0 %v2352_v60 }
  0xfc   : > { %879 = vperm.xlu1 %2651, %v730_v54   ;;  %1119 = vperm.xlu0 %2659, %v730_v54  }
 0x100   : > { %2652 = vset.pattern.permute.xlu1 %v3046_v63  ;;  %2663 = vset.pattern.permute.xlu0 %v3046_v63 }
 0x101   : > { %1239 = vperm.xlu1 %2652, %v3423_v45   ;;  %923 = vperm.xlu0 %2663, %v3435_v5  }
 0x105   : > { %919 = vperm.xlu1 %2652, %v730_v54   ;;  %2664 = vset.pattern.permute.xlu0 %v3043_v59 }
 0x106   : > { %1160 = vperm.xlu0 %2664, %v3423_v45  }
 0x109   : > { %2653 = vset.pattern.permute.xlu1 %v3047_v6 }
 0x10a   : > { %1279 = vperm.xlu1 %2653, %v3423_v45   ;;  %845 = vperm.xlu0 %2664, %v3435_v5  }
 0x10e   : > { %959 = vperm.xlu1 %2653, %v730_v54   ;;  %1175 = vperm.xlu0 %2664, %v3445_v8  }
 0x112   : > { %2654 = vset.pattern.permute.xlu1 %v3048_v9  ;;  %2673 = vset.pattern.permute.xlu0 %v3049_v11 }
 0x113   : > { %1319 = vperm.xlu1 %2654, %v3423_v45   ;;  %1363 = vperm.xlu0 %2673, %v3451_v10  }
 0x117   : > { %2655 = vset.pattern.permute.xlu1 %v3049_v11  ;;  %2674 = vset.pattern.permute.xlu0 %v3047_v6 }
 0x118   : > { %1359 = vperm.xlu1 %2655, %v3423_v45   ;;  %1283 = vperm.xlu0 %2674, %v3451_v10  }
 0x11c   : > { %1039 = vperm.xlu1 %2655, %v730_v54   ;;  %963 = vperm.xlu0 %2674, %v3435_v5  }
 0x120   : > { %2657 = vset.pattern.permute.xlu1 %v3042_v1  ;;  %967 = vperm.xlu0 %2674, %v3462_v12  }
 0x121   : > { %1079 = vperm.xlu1 %2657, %v730_v54  }
 0x124   : > { %1291 = vperm.xlu0 %2674, %v3445_v8  }
 0x125   : > { %2658 = vset.pattern.permute.xlu1 %v3045_v62 }
 0x126   : > { %1439 = vperm.xlu1 %2658, %v3423_v45   ;;  %v2368_v45 = vpack.c.bf16 %v601_v44, %v598_v43  ;;  %v623_v43 = vld [vmem:[#allocation10 + $0x158] sm:$0xff]  ;;  %v622_v44 = vld [vmem:[#allocation10 + $0x150] sm:$0xff] }
 0x128   : > { %971 = vperm.xlu0 %2674, %v3469_v13  }
 0x12a   : > { %2660 = vset.pattern.permute.xlu1 %v3043_v59 }
 0x12b   : > { %1165 = vperm.xlu1 %2660, %v3451_v10  }
 0x12c   : > { %2684 = vset.pattern.permute.xlu0 %v3048_v9 }
 0x12d   : > { %999 = vperm.xlu0 %2684, %v730_v54   ;;  %v607_v54 = vld [vmem:[#allocation10 + $0xd8] sm:$0xff] }
 0x12e   : > { %v2372_v56 = vpack.c.bf16 %v607_v54, %v604_v51  ;;  %v2384_v51 = vpack.c.bf16 %v625_v49, %v622_v44  ;;  %v597_v44 = vld [vmem:[#allocation10 + $0x88] sm:$0xff]  ;;  %v651_v49 = vld [vmem:[#allocation10 + $0x238] sm:$0xff] }
 0x12f   : > { %2661 = vset.pattern.permute.xlu1 %v3041_v0 }
 0x130   : > { %1203 = vperm.xlu1 %2661, %v3451_v10  }
 0x131   : > { %1323 = vperm.xlu0 %2684, %v3451_v10  }
 0x134   : > { %883 = vperm.xlu1 %2661, %v3435_v5  }
 0x135   : > { %1327 = vperm.xlu0 %2684, %v3480_v14  }
 0x138   : > { %2662 = vset.pattern.permute.xlu1 %v3046_v63 }
 0x139   : > { %1243 = vperm.xlu1 %2662, %v3451_v10   ;;  %1007 = vperm.xlu0 %2684, %v3462_v12  }
 0x13d   : > { %2665 = vset.pattern.permute.xlu1 %v3043_v59  ;;  %1011 = vperm.xlu0 %2684, %v3469_v13  }
 0x13e   : > { %1170 = vperm.xlu1 %2665, %v3480_v14  }
 0x141   : > { %2688 = vset.pattern.permute.xlu0 %v3045_v62 }
 0x142   : > { %2666 = vset.pattern.permute.xlu1 %v3041_v0  ;;  %1123 = vperm.xlu0 %2688, %v3435_v5  }
 0x143   : > { %1207 = vperm.xlu1 %2666, %v3480_v14  }
 0x146   : > { %1447 = vperm.xlu0 %2688, %v3480_v14  }
 0x147   : > { %2667 = vset.pattern.permute.xlu1 %v3043_v59 }
 0x148   : > { %850 = vperm.xlu1 %2667, %v3462_v12  }
 0x14a   : > { %2691 = vset.pattern.permute.xlu0 %v3042_v1 }
 0x14b   : > { %1411 = vperm.xlu0 %2691, %v3445_v8  }
 0x14c   : > { %2668 = vset.pattern.permute.xlu1 %v3041_v0 }
 0x14d   : > { %887 = vperm.xlu1 %2668, %v3462_v12  }
 0x14f   : > { %2694 = vset.pattern.permute.xlu0 %v3045_v62 }
 0x150   : > { %1131 = vperm.xlu0 %2694, %v3469_v13  }
 0x151   : > { %2669 = vset.pattern.permute.xlu1 %v3046_v63 }
 0x152   : > { %1247 = vperm.xlu1 %2669, %v3480_v14  }
 0x156   : > { %927 = vperm.xlu1 %2669, %v3462_v12  }
 0x15a   : > { %2670 = vset.pattern.permute.xlu1 %v3048_v9 }
 0x15b   : > { %1003 = vperm.xlu1 %2670, %v3435_v5  }
 0x15f   : > { %2671 = vset.pattern.permute.xlu1 %v3041_v0 }
 0x160   : > { %1211 = vperm.xlu1 %2671, %v3445_v8  }
 0x164   : > { %2672 = vset.pattern.permute.xlu1 %v3047_v6 }
 0x165   : > { %1287 = vperm.xlu1 %2672, %v3480_v14  }
 0x169   : > { %2675 = vset.pattern.permute.xlu1 %v3043_v59  ;;  %v497_v24 = vpop.xlane.xlu0 %496 }
 0x16a   : > { %v501_v25 = vpop.xlane.xlu1 %500  ;;  %855 = vperm.xlu1 %2675, %v3469_v13   ;;  %v504_v28 = vmax.f32 %v497_v24, 1e-24 }
 0x16b   : > { %v506_v29 = vmax.f32 %v501_v25, 1e-24 }
 0x16c   : > { %2695 = vrsqrt.f32 %v504_v28  ;;  %v617_v28 = vld [vmem:[#allocation10 + $0x128] sm:$0xff] }
 0x16d   : > { %v499_v31 = vpop.xlane.xlu0 %498  ;;  %2697 = vrsqrt.f32 %v506_v29  ;;  %v620_v29 = vld [vmem:[#allocation10 + $0x140] sm:$0xff] }
 0x16e   : > { %v503_v32 = vpop.xlane.xlu1 %502  ;;  %2676 = vset.pattern.permute.xlu1 %v3041_v0  ;;  %v505_v36 = vmax.f32 %v499_v31, 1e-24  ;;  %v2366_v0 = vpack.c.bf16 %v602_v42, %v599_v41  ;;  %v2378_v33 = vpack.c.bf16 %v620_v29, %v617_v28  ;;  %v588_v29 = vld [vmem:[#allocation10 + $0x40] sm:$0xff] }
 0x16f   : > { %v507_v37 = vmax.f32 %v503_v32, 1e-24  ;;  %891 = vperm.xlu1 %2676, %v3469_v13  }
 0x170   : > { %2699 = vrsqrt.f32 %v505_v36  ;;  %2367 = vmatprep.subr.bf16.mxu1 %v2366_v0  ;;  %v2380_v36 = vpack.c.bf16 %v619_v34, %v616_v30  ;;  %v626_v0 = vld [vmem:[#allocation10 + $0x170] sm:$0xff]  ;;  %v591_v30 = vld [vmem:[#allocation10 + $0x58] sm:$0xff] }
 0x171   : > { %2701 = vrsqrt.f32 %v507_v37  ;;  %2369 = vmatpush1.bf16.msra.mxu1 %v2368_v45 }
 0x172   : > { %2371 = vmatprep.subr.bf16.mxu1 %v2370_v53  ;;  %v3551_v42 = vpop.permute.xlu1 %1199 }
 0x173   : > { %2677 = vset.pattern.permute.xlu1 %v3049_v11 }
 0x174   : > { %1043 = vperm.xlu1 %2677, %v3435_v5  }
 0x175   : > { %2373 = vmatpush1.bf16.msra.mxu1 %v2372_v56  ;;  %v632_v56 = vld [vmem:[#allocation10 + $0x1a0] sm:$0xff] }
 0x176   : > { %v2696_v46 = vpop.eup %2695 }
 0x177   : > { %v2698_v47 = vpop.eup %2697  ;;  %v3518_v48 = vmul.f32 %v2696_v46, %v3406_v2 }
 0x178   : > { %2678 = vset.pattern.permute.xlu1 %v3046_v63  ;;  %v3522_v52 = vmul.f32 %v2698_v47, %v3410_v4  ;;  %v2382_v47 = vpack.c.bf16 %v626_v0, %v623_v43  ;;  %v594_v0 = vld [vmem:[#allocation10 + $0x70] sm:$0xff] }
 0x179   : > { %4268 = vst [vmem:[#allocation28_spill] sm:$0xff] %v3518_v48  ;;  %1251 = vperm.xlu1 %2678, %v3445_v8   ;;  %v516_v55 = vrot.slane %v3518_v48, 4  ;;  %814 = vmatmul.mubr.f32.vlgmr.msra.gmra.mrb[0].mxu0 %v3518_v48 }
 0x17a   : > { %4269 = vst [vmem:[#allocation29_spill] sm:$0xff] %v3522_v52  ;;  %v2700_v57 = vpop.eup %2699  ;;  %v528_v2 = vrot.slane %v3522_v52, 4  ;;  %819 = vmatprep.mubr.f32.mxu0 %v4204_v61 }
 0x17b   : > { %v2702_v58 = vpop.eup %2701  ;;  %v517_v59 = vadd.f32 %v516_v55, %v3518_v48  ;;  %v3531_v4 = vmul.f32 %v2700_v57, %v3408_v3  ;;  %v2374_v3 = vpack.c.bf16 %v614_v16, %v611_v15  ;;  %v630_v57 = vld [vmem:[#allocation10 + $0x190] sm:$0xff]  ;;  %v631_v15 = vld [vmem:[#allocation10 + $0x198] sm:$0xff]  ;;  %v3701_v48 = vld [vmem:[#allocation11] sm:$0xff] }
 0x17c   : > { %v529_v60 = vadd.f32 %v528_v2, %v3522_v52  ;;  %v3535_v6 = vmul.f32 %v2702_v58, %v3416_v7  ;;  %v2376_v7 = vpack.c.bf16 %v613_v20, %v610_v17  ;;  %v3561_v2 = vpop.permute.xlu1 %840  ;;  %4296 = vst [vmem:[#allocation55_spill] sm:$0xff] %v3701_v48 }
 0x17d   : > { %4270 = vst [vmem:[#allocation30_spill] sm:$0xff] %v3531_v4  ;;  %2679 = vset.pattern.permute.xlu1 %v3042_v1  ;;  %v518_v18 = vrot.slane %v517_v59, 2  ;;  %v522_v19 = vrot.slane %v3531_v4, 4  ;;  %820 = vmatmul.mubr.f32.gmra.mrb[2].mxu0 %v3531_v4  ;;  %4272 = vst [vmem:[#allocation32_spill] sm:$0xff] %v3561_v2 }
 0x17e   : > { %4271 = vst [vmem:[#allocation31_spill] sm:$0xff] %v3535_v6  ;;  %1403 = vperm.xlu1 %2679, %v3451_v10   ;;  %v530_v21 = vrot.slane %v529_v60, 2  ;;  %v534_v22 = vrot.slane %v3535_v6, 4  ;;  %825 = vmatprep.mubr.f32.mxu0 %v4204_v61 }
 0x17f   : > { %v523_v23 = vadd.f32 %v522_v19, %v3531_v4  ;;  %2375 = vmatprep.subr.bf16.mxu1 %v2374_v3  ;;  %v519_v24 = vadd.f32 %v518_v18, %v517_v59  ;;  %v633_v59 = vld [vmem:[#allocation10 + $0x1a8] sm:$0xff]  ;;  %v582_v18 = vld [vmem:[#allocation10 + $0x10] sm:$0xff]  ;;  %v635_v3 = vld [vmem:[#allocation10 + $0x1b8] sm:$0xff] }
 0x180   : > { %v535_v25 = vadd.f32 %v534_v22, %v3535_v6  ;;  %2377 = vmatpush1.bf16.msra.mxu1 %v2376_v7  ;;  %v531_v26 = vadd.f32 %v530_v21, %v529_v60  ;;  %v628_v60 = vld [vmem:[#allocation10 + $0x180] sm:$0xff]  ;;  %v2418_v16 = vpack.c.bf16 %v633_v59, %v630_v57  ;;  %v585_v19 = vld [vmem:[#allocation10 + $0x28] sm:$0xff]  ;;  %v638_v21 = vld [vmem:[#allocation10 + $0x1d0] sm:$0xff] }
 0x181   : > { %v524_v27 = vrot.slane %v523_v23, 2  ;;  %826 = vmatmul.mubr.f32.gmra.mrb[4].mxu0 %v3522_v52  ;;  %v520_v31 = vrot.slane %v519_v24, 1  ;;  %2379 = vmatprep.subr.bf16.mxu1 %v2378_v33  ;;  %v2388_v17 = vpack.c.bf16 %v631_v15, %v628_v60  ;;  %v2420_v20 = vpack.c.bf16 %v585_v19, %v582_v18  ;;  %v636_v22 = vld [vmem:[#allocation10 + $0x1c0] sm:$0xff]  ;;  %v639_v7 = vld [vmem:[#allocation10 + $0x1d8] sm:$0xff]  ;;  %v654_v60 = vld [vmem:[#allocation10 + $0x250] sm:$0xff] }
 0x182   : > { %2680 = vset.pattern.permute.xlu1 %v3046_v63  ;;  %v536_v32 = vrot.slane %v535_v25, 2  ;;  %831 = vmatprep.mubr.f32.mxu0 %v4204_v61  ;;  %v532_v35 = vrot.slane %v531_v26, 1  ;;  %v656_v59 = vld [vmem:[#allocation10 + $0x260] sm:$0xff]  ;;  %v655_v18 = vld [vmem:[#allocation10 + $0x258] sm:$0xff] }
 0x183   : > { %931 = vperm.xlu1 %2680, %v3469_v13   ;;  %v521_v37 = vadd.f32 %v520_v31, %v519_v24  ;;  %v525_v38 = vadd.f32 %v524_v27, %v523_v23  ;;  %2419 = vmatprep.subr.bf16.mxu0 %v2418_v16  ;;  %v3567_v23 = vpop.permute.xlu1 %879  ;;  %v2390_v24 = vpack.c.bf16 %v638_v21, %v635_v3  ;;  %v637_v27 = vld [vmem:[#allocation10 + $0x1c8] sm:$0xff]  ;;  %v2197_v4 = vld [vmem:[%s4293_s18 + $0x1] ss:$2 sm:$0x3] }
 0x184   : > { %v533_v39 = vadd.f32 %v532_v35, %v531_v26  ;;  %v537_v40 = vadd.f32 %v536_v32, %v535_v25  ;;  %2381 = vmatpush1.bf16.msra.mxu1 %v2380_v36  ;;  %4273 = vst [vmem:[#allocation33_spill] sm:$0xff] %v3567_v23  ;;  %v2422_v25 = vpack.c.bf16 %v639_v7, %v636_v22  ;;  %v634_v26 = vld [vmem:[#allocation10 + $0x1b0] sm:$0xff]  ;;  %v657_v16 = vld [vmem:[#allocation10 + $0x268] sm:$0xff] }
 0x185   : > { %832 = vmatmul.mubr.f32.gmra.mrb[6].mxu0 %v3535_v6  ;;  %v526_v63 = vrot.slane %v525_v38, 1  ;;  %v540_v41 = vmul.f32 0.125, %v521_v37  ;;  %2383 = vmatprep.subr.bf16.mxu1 %v2382_v47  ;;  %v2392_v28 = vpack.c.bf16 %v637_v27, %v634_v26  ;;  %v641_v37 = vld [vmem:[#allocation10 + $0x1e8] sm:$0xff]  ;;  %v2434_v19 = vpack.c.bf16 %v657_v16, %v654_v60  ;;  %v660_v26 = vld [vmem:[#allocation10 + $0x280] sm:$0xff] }
 0x186   : > { %v538_v45 = vrot.slane %v537_v40, 1  ;;  %v542_v46 = vmul.f32 0.125, %v533_v39  ;;  %2421 = vmatpush3.bf16.msra.mxu0 %v2420_v20  ;;  %v642_v39 = vld [vmem:[#allocation10 + $0x1f0] sm:$0xff]  ;;  %v609_v21 = vld [vmem:[#allocation10 + $0xe8] sm:$0xff] }
 0x187   : > { %2681 = vset.pattern.permute.xlu1 %v3042_v1  ;;  %v527_v50 = vadd.f32 %v526_v63, %v525_v38  ;;  %544 = vst [vmem:[%s3555_s21] sm:$0x1] %v540_v41  ;;  %2423 = vmatprep.subr.bf16.mxu0 %v2422_v25  ;;  %v3571_v31 = vpop.permute.xlu1 %1239  ;;  %v644_v38 = vld [vmem:[#allocation10 + $0x200] sm:$0xff]  ;;  %v645_v63 = vld [vmem:[#allocation10 + $0x208] sm:$0xff]  ;;  %v643_v41 = vld [vmem:[#allocation10 + $0x1f8] sm:$0xff] }
 0x188   : > { %1083 = vperm.xlu1 %2681, %v3435_v5   ;;  %v539_v53 = vadd.f32 %v538_v45, %v537_v40  ;;  %546 = vst [vmem:[%s3555_s21 + $0x2] sm:$0x1] %v542_v46  ;;  %2385 = vmatpush1.bf16.msra.mxu1 %v2384_v51  ;;  %v629_v5 = vld [vmem:[#allocation10 + $0x188] sm:$0xff]  ;;  %v2394_v40 = vpack.c.bf16 %v644_v38, %v641_v37  ;;  %v650_v45 = vld [vmem:[#allocation10 + $0x230] sm:$0xff]  ;;  %v648_v46 = vld [vmem:[#allocation10 + $0x220] sm:$0xff] }
 0x189   : > { %v541_v54 = vmul.f32 0.125, %v527_v50  ;;  %v2386_v58 = vpack.c.bf16 %v632_v56, %v629_v5  ;;  %v646_v50 = vld [vmem:[#allocation10 + $0x210] sm:$0xff]  ;;  %v649_v51 = vld [vmem:[#allocation10 + $0x228] sm:$0xff]  ;;  %v603_v5 = vld [vmem:[#allocation10 + $0xb8] sm:$0xff] }
 0x18a   : > { %v543_v55 = vmul.f32 0.125, %v539_v53  ;;  %v2430_v53 = vpack.c.bf16 %v651_v49, %v648_v46  ;;  %v606_v20 = vld [vmem:[#allocation10 + $0xd0] sm:$0xff]  ;;  %v612_v38 = vld [vmem:[#allocation10 + $0x100] sm:$0xff]  ;;  %v621_v49 = vld [vmem:[#allocation10 + $0x148] sm:$0xff] }
 0x18b   : > { %545 = vst [vmem:[%s3555_s21 + $0x1] sm:$0x1] %v541_v54  ;;  %2387 = vmatprep.subr.bf16.mxu1 %v2386_v58  ;;  %v3575_v32 = vpop.permute.xlu1 %919  ;;  %v2400_v54 = vpack.c.bf16 %v649_v51, %v646_v50  ;;  %v653_v58 = vld [vmem:[#allocation10 + $0x248] sm:$0xff]  ;;  %v2436_v22 = vpack.c.bf16 %v609_v21, %v606_v20  ;;  %v662_v25 = vld [vmem:[#allocation10 + $0x290] sm:$0xff]  ;;  %v671_v51 = vld [vmem:[#allocation10 + $0x2d8] sm:$0xff] }
 0x18c   : > { %2682 = vset.pattern.permute.xlu1 %v3049_v11  ;;  %547 = vst [vmem:[%s3555_s21 + $0x3] sm:$0x1] %v543_v55  ;;  %2389 = vmatpush1.bf16.msra.mxu1 %v2388_v17  ;;  %4274 = vst [vmem:[#allocation34_spill] sm:$0xff] %v3575_v32  ;;  %v600_v55 = vld [vmem:[#allocation10 + $0xa0] sm:$0xff]  ;;  %v2402_v15 = vpack.c.bf16 %v656_v59, %v653_v58  ;;  %v618_v46 = vld [vmem:[#allocation10 + $0x130] sm:$0xff] }
 0x18d   : > { %1367 = vperm.xlu1 %2682, %v3480_v14   ;;  %2391 = vmatprep.subr.bf16.mxu1 %v2390_v24  ;;  %v2432_v57 = vpack.c.bf16 %v603_v5, %v600_v55  ;;  %v652_v17 = vld [vmem:[#allocation10 + $0x240] sm:$0xff]  ;;  %v659_v24 = vld [vmem:[#allocation10 + $0x278] sm:$0xff]  ;;  %v2444_v50 = vpack.c.bf16 %v621_v49, %v618_v46  ;;  %v670_v59 = vld [vmem:[#allocation10 + $0x2d0] sm:$0xff] }
 0x18e   : > { %v2404_v3 = vpack.c.bf16 %v655_v18, %v652_v17  ;;  %v2406_v27 = vpack.c.bf16 %v662_v25, %v659_v24  ;;  %v675_v5 = vld [vmem:[#allocation10 + $0x2f8] sm:$0xff]  ;;  %v673_v60 = vld [vmem:[#allocation10 + $0x2e8] sm:$0xff]  ;;  %v680_v21 = vld [vmem:[#allocation11 + $0x20] sm:$0xff] }
 0x18f   : > { %v3579_v33 = vpop.permute.xlu1 %1279  ;;  %v2416_v16 = vpack.c.bf16 %v673_v60, %v670_v59  ;;  %v627_v17 = vld [vmem:[#allocation10 + $0x178] sm:$0xff]  ;;  %v677_v20 = vld [vmem:[#allocation11 + $0x8] sm:$0xff] }
 0x190   : > { %2393 = vmatpush1.bf16.msra.mxu1 %v2392_v28  ;;  %v663_v28 = vld [vmem:[#allocation10 + $0x298] sm:$0xff]  ;;  %v2450_v25 = vpack.c.bf16 %v680_v21, %v677_v20 }
 0x191   : > { %2683 = vset.pattern.permute.xlu1 %v3045_v62  ;;  %2395 = vmatprep.subr.bf16.mxu1 %v2394_v40 }
 0x192   : > { %1443 = vperm.xlu1 %2683, %v3451_v10   ;;  %v2424_v10 = vpack.c.bf16 %v591_v30, %v588_v29  ;;  %v658_v29 = vld [vmem:[#allocation10 + $0x270] sm:$0xff]  ;;  %v661_v30 = vld [vmem:[#allocation10 + $0x288] sm:$0xff] }
 0x193   : > { %v3584_v34 = vpop.permute.xlu1 %959  ;;  %v2408_v37 = vpack.c.bf16 %v661_v30, %v658_v29  ;;  %v3626_v29 = vpop.permute.xlu0 %1399 }
 0x194   : > { %2425 = vmatpush3.bf16.msra.mxu0 %v2424_v10  ;;  %4275 = vst [vmem:[#allocation35_spill] sm:$0xff] %v3584_v34  ;;  %v2438_v10 = vpack.c.bf16 %v663_v28, %v660_v26  ;;  %v681_v26 = vld [vmem:[#allocation11 + $0x28] sm:$0xff]  ;;  %4283 = vst [vmem:[#allocation43_spill] sm:$0xff] %v3626_v29 }
 0x196   : > { %2685 = vset.pattern.permute.xlu1 %v3049_v11 }
 0x197   : > { %1047 = vperm.xlu1 %2685, %v3462_v12  }
 0x19b   : > { %2686 = vset.pattern.permute.xlu1 %v3048_v9  ;;  %v3587_v9 = vpop.permute.xlu1 %1319 }
 0x19c   : > { %1331 = vperm.xlu1 %2686, %v3445_v8  }
 0x19f   : > { %v3591_v35 = vpop.permute.xlu1 %1359 }
 0x1a0   : > { %2687 = vset.pattern.permute.xlu1 %v3042_v1 }
 0x1a1   : > { %1407 = vperm.xlu1 %2687, %v3480_v14  }
 0x1a3   : > { %v3595_v14 = vpop.permute.xlu1 %1039 }
 0x1a4   : > { %4276 = vst [vmem:[#allocation36_spill] sm:$0xff] %v3595_v14 }
 0x1a5   : > { %1087 = vperm.xlu1 %2687, %v3462_v12  }
 0x1a9   : > { %2689 = vset.pattern.permute.xlu1 %v3049_v11  ;;  %v3599_v11 = vpop.permute.xlu1 %1079 }
 0x1aa   : > { %1371 = vperm.xlu1 %2689, %v3445_v8   ;;  %4277 = vst [vmem:[#allocation37_spill] sm:$0xff] %v3599_v11  ;;  %v687_v11 = vld [vmem:[#allocation11 + $0x58] sm:$0xff] }
 0x1ad   : > { %v3601_v36 = vpop.permute.xlu1 %1439 }
 0x1ae   : > { %1051 = vperm.xlu1 %2689, %v3469_v13   ;;  %4278 = vst [vmem:[#allocation38_spill] sm:$0xff] %v3601_v36 }
 0x1b2   : > { %2690 = vset.pattern.permute.xlu1 %v3045_v62 }
 0x1b3   : > { %1127 = vperm.xlu1 %2690, %v3462_v12   ;;  %v3603_v12 = vpop.permute.xlu1 %1165 }
 0x1b4   : > { %4279 = vst [vmem:[#allocation39_spill] sm:$0xff] %v3603_v12 }
 0x1b7   : > { %2692 = vset.pattern.permute.xlu1 %v3042_v1  ;;  %v640_v1 = vld [vmem:[#allocation10 + $0x1e0] sm:$0xff]  ;;  %v3605_v56 = vpop.permute.xlu1 %1203 }
 0x1b8   : > { %1091 = vperm.xlu1 %2692, %v3469_v13   ;;  %v2426_v13 = vpack.c.bf16 %v645_v63, %v642_v39  ;;  %v2396_v43 = vpack.c.bf16 %v643_v41, %v640_v1  ;;  %4280 = vst [vmem:[#allocation40_spill] sm:$0xff] %v3605_v56  ;;  %v615_v39 = vld [vmem:[#allocation10 + $0x118] sm:$0xff]  ;;  %v665_v1 = vld [vmem:[#allocation10 + $0x2a8] sm:$0xff]  ;;  %v668_v41 = vld [vmem:[#allocation10 + $0x2c0] sm:$0xff] }
 0x1b9   : > { %v2440_v40 = vpack.c.bf16 %v615_v39, %v612_v38 }
 0x1ba   : > { %2427 = vmatprep.subr.bf16.mxu0 %v2426_v13  ;;  %2397 = vmatpush1.bf16.msra.mxu1 %v2396_v43  ;;  %v666_v13 = vld [vmem:[#allocation10 + $0x2b0] sm:$0xff]  ;;  %v2410_v43 = vpack.c.bf16 %v668_v41, %v665_v1 }
 0x1bb   : > { %v3607_v7 = vpop.permute.xlu1 %883 }
 0x1bc   : > { %2693 = vset.pattern.permute.xlu1 %v3045_v62  ;;  %v2428_v62 = vpack.c.bf16 %v597_v44, %v594_v0  ;;  %v669_v0 = vld [vmem:[#allocation10 + $0x2c8] sm:$0xff] }
 0x1bd   : > { %1451 = vperm.xlu1 %2693, %v3445_v8   ;;  %v647_v8 = vld [vmem:[#allocation10 + $0x218] sm:$0xff]  ;;  %v2442_v44 = vpack.c.bf16 %v669_v0, %v666_v13 }
 0x1be   : > { %2429 = vmatpush3.bf16.msra.mxu0 %v2428_v62  ;;  %v2398_v47 = vpack.c.bf16 %v650_v45, %v647_v8  ;;  %v664_v8 = vld [vmem:[#allocation10 + $0x2a0] sm:$0xff]  ;;  %v667_v45 = vld [vmem:[#allocation10 + $0x2b8] sm:$0xff] }
 0x1bf   : > { %2431 = vmatprep.subr.bf16.mxu0 %v2430_v53  ;;  %v3609_v63 = vpop.permute.xlu1 %1243  ;;  %v674_v53 = vld [vmem:[#allocation10 + $0x2f0] sm:$0xff] }
 0x1c0   : > { %2399 = vmatprep.subr.bf16.mxu1 %v2398_v47  ;;  %4281 = vst [vmem:[#allocation41_spill] sm:$0xff] %v3609_v63  ;;  %v2412_v47 = vpack.c.bf16 %v667_v45, %v664_v8  ;;  %v2414_v55 = vpack.c.bf16 %v674_v53, %v671_v51 }
 0x1c1   : > { %2401 = vmatpush1.bf16.msra.mxu1 %v2400_v54  ;;  %v672_v54 = vld [vmem:[#allocation10 + $0x2e0] sm:$0xff] }
 0x1c2   : > { %2433 = vmatpush3.bf16.msra.mxu0 %v2432_v57  ;;  %2403 = vmatprep.subr.bf16.mxu1 %v2402_v15  ;;  %v2446_v57 = vpack.c.bf16 %v675_v5, %v672_v54  ;;  %v624_v15 = vld [vmem:[#allocation10 + $0x160] sm:$0xff] }
 0x1c3   : > { %2435 = vmatprep.subr.bf16.mxu0 %v2434_v19  ;;  %v3611_v62 = vpop.permute.xlu1 %1170  ;;  %v2448_v19 = vpack.c.bf16 %v627_v17, %v624_v15  ;;  %v724_v17 = vld [vmem:[%s4293_s18] ss:$2 sm:$0x3] }
 0x1c5   : > { %2405 = vmatpush1.bf16.msra.mxu1 %v2404_v3 }
 0x1c6   : > { %2437 = vmatpush3.bf16.msra.mxu0 %v2436_v22  ;;  %2407 = vmatprep.subr.bf16.mxu1 %v2406_v27  ;;  %v678_v22 = vld [vmem:[#allocation11 + $0x10] sm:$0xff] }
 0x1c7   : > { %2439 = vmatprep.subr.bf16.mxu0 %v2438_v10  ;;  %v3613_v58 = vpop.permute.xlu1 %1207  ;;  %v3621_v27 = vpack.c.bf16 %v681_v26, %v678_v22  ;;  %v3630_v10 = vpop.permute.xlu0 %1119 }
 0x1c8   : > { %4284 = vst [vmem:[#allocation44_spill] sm:$0xff] %v3630_v10 }
 0x1c9   : > { %2409 = vmatpush1.bf16.msra.mxu1 %v2408_v37  ;;  %4282 = vst [vmem:[#allocation42_spill] sm:$0xff] %v3621_v27 }
 0x1ca   : > { %2441 = vmatpush3.bf16.msra.mxu0 %v2440_v40  ;;  %2411 = vmatprep.subr.bf16.mxu1 %v2410_v43 }
 0x1cb   : > { %2443 = vmatprep.subr.bf16.mxu0 %v2442_v44  ;;  %v3615_v18 = vpop.permute.xlu1 %850  ;;  %v3634_v38 = vpop.permute.xlu0 %923 }
 0x1cd   : > { %2413 = vmatpush1.bf16.msra.mxu1 %v2412_v47 }
 0x1ce   : > { %2445 = vmatpush3.bf16.msra.mxu0 %v2444_v50  ;;  %2415 = vmatprep.subr.bf16.mxu1 %v2414_v55  ;;  %v739_v55 = vlaneseq }
 0x1cf   : > { %2447 = vmatprep.subr.bf16.mxu0 %v2446_v57  ;;  %v3617_v3 = vpop.permute.xlu1 %887  ;;  %v3638_v40 = vpop.permute.xlu0 %1160 }
 0x1d0   : > { %v740_v59 = vshrl.u32 %v739_v55, 7 }
 0x1d1   : > { %2417 = vmatpush1.bf16.msra.mxu1 %v2416_v16 }
 0x1d2   : > { %2449 = vmatpush3.bf16.msra.mxu0 %v2448_v19  ;;  %2451 = vmatprep.subr.bf16.mxu1 %v2450_v25  ;;  %v3678_v16 = vsub.s32 0, %v740_v59  ;;  %v3683_v20 = vsub.s32 1, %v740_v59  ;;  %v3729_v14 = vsub.s32 5, %v740_v59  ;;  %v3733_v34 = vsub.s32 7, %v740_v59 }
 0x1d3   : > { %v3619_v24 = vpop.permute.xlu1 %1247  ;;  %2483 = vmatprep.subr.bf16.mxu0 %v3621_v27  ;;  %v3642_v41 = vpop.permute.xlu0 %845 }
 0x1d4   : > { %v3686_v22 = vrot.slane %v724_v17, %v3678_v16  ;;  %v3693_v55 = vrot.slane %v724_v17, %v3683_v20  ;;  %v3710_v17 = vld [vmem:[#allocation11 + $0x38] sm:$0xff]  ;;  %v3741_v23 = vrot.slane %v2197_v4, %v3678_v16 }
 0x1d5   : > { %4299 = vst [vmem:[#allocation58_spill] sm:$0xff] %v3710_v17 }
 0x1d6   : > { %4305 = vst [vmem:[#allocation64_spill] sm:$0xff] %v3741_v23 }
 0x1d7   : > { %v3624_v28 = vpop.permute.xlu1 %927  ;;  %v3646_v43 = vpop.permute.xlu0 %1175 }
 0x1db   : > { %v3628_v30 = vpop.permute.xlu1 %1003  ;;  %v3650_v44 = vpop.permute.xlu0 %1363 }
 0x1dc   : > { %4285 = vst [vmem:[#allocation45_spill] sm:$0xff] %v3650_v44  ;;  %v3712_v44 = vld [vmem:[#allocation11 + $0x50] sm:$0xff] }
 0x1dd   : > { %4300 = vst [vmem:[#allocation59_spill] sm:$0xff] %v3712_v44 }
 0x1df   : > { %v3632_v37 = vpop.permute.xlu1 %1211  ;;  %v3654_v45 = vpop.permute.xlu0 %1283 }
 0x1e0   : > { %4287 = vst [vmem:[#allocation47_spill] sm:$0xff] %v3654_v45  ;;  %v3716_v45 = vsub.s32 4, %v740_v59 }
 0x1e3   : > { %v3658_v47 = vpop.permute.xlu0 %963 }
 0x1e4   : > { %v3636_v39 = vpop.permute.xlu1 %1287 }
 0x1e7   : > { %v3662_v50 = vpop.permute.xlu0 %967 }
 0x1e9   : > { %v3640_v1 = vpop.permute.xlu1 %855 }
 0x1eb   : > { %v3666_v53 = vpop.permute.xlu0 %1291 }
 0x1ec   : > { %4289 = vst [vmem:[#allocation49_spill] sm:$0xff] %v3666_v53  ;;  %v3744_v53 = vrot.slane %v2197_v4, %v3683_v20 }
 0x1ee   : > { %v3644_v13 = vpop.permute.xlu1 %891  ;;  %4306 = vst [vmem:[#allocation65_spill] sm:$0xff] %v3744_v53 }
 0x1ef   : > { %v3670_v5 = vpop.permute.xlu0 %971 }
 0x1f3   : > { %v3648_v0 = vpop.permute.xlu1 %1043  ;;  %v3674_v60 = vpop.permute.xlu0 %999 }
 0x1f4   : > { %4292 = vst [vmem:[#allocation52_spill] sm:$0xff] %v3674_v60  ;;  %v3731_v60 = vsub.s32 6, %v740_v59 }
 0x1f6   : > { %4303 = vst [vmem:[#allocation62_spill] sm:$0xff] %v3731_v60 }
 0x1f7   : > { %v3688_v25 = vpop.permute.xlu0 %1323 }
 0x1f8   : > { %v3652_v8 = vpop.permute.xlu1 %1251  ;;  %4294 = vst [vmem:[#allocation53_spill] sm:$0xff] %v3688_v25  ;;  %v3714_v25 = vsub.s32 3, %v740_v59 }
 0x1f9   : > { %4286 = vst [vmem:[#allocation46_spill] sm:$0xff] %v3652_v8 }
 0x1fb   : > { %v3735_v32 = vpop.permute.xlu0 %1327 }
 0x1fd   : > { %v3656_v46 = vpop.permute.xlu1 %1403 }
 0x1fe   : > { %4288 = vst [vmem:[#allocation48_spill] sm:$0xff] %v3656_v46  ;;  %v3708_v46 = vsub.s32 2, %v740_v59 }
 0x202   : > { %v3660_v49 = vpop.permute.xlu1 %931 }
 0x207   : > { %v3664_v51 = vpop.permute.xlu1 %1083 }
 0x20c   : > { %v3668_v54 = vpop.permute.xlu1 %1367 }
 0x20d   : > { %4290 = vst [vmem:[#allocation50_spill] sm:$0xff] %v3668_v54  ;;  %v3724_v54 = vld [vmem:[#allocation11 + $0x48] sm:$0xff] }
 0x20e   : > { %4302 = vst [vmem:[#allocation61_spill] sm:$0xff] %v3724_v54 }
 0x211   : > { %v3672_v57 = vpop.permute.xlu1 %1443 }
 0x212   : > { %4291 = vst [vmem:[#allocation51_spill] sm:$0xff] %v3672_v57  ;;  %v3703_v57 = vld [vmem:[#allocation11 + $0x18] sm:$0xff] }
 0x213   : > { %4297 = vst [vmem:[#allocation56_spill] sm:$0xff] %v3703_v57 }
 0x216   : > { %v3676_v15 = vpop.permute.xlu1 %1047 }
 0x21b   : > { %v3690_v26 = vpop.permute.xlu1 %1331 }
 0x21c   : > { %4295 = vst [vmem:[#allocation54_spill] sm:$0xff] %v3690_v26 }
 0x220   : > { %v3748_v2 = vpop.permute.xlu1 %1407 }
 0x221   : > { %4307 = vst [vmem:[#allocation66_spill] sm:$0xff] %v3748_v2 }
 0x24c   : > { %v815_v19 = vpop.f32.mrb[0].mxu0 }
 0x24d   : > { %v817_v21 = vpop.f32.mrb[1].mxu0  ;;  %v3706_v27 = vadd.f32 %v815_v19, %v3686_v22  ;;  %v3722_v19 = vld [vmem:[#allocation11 + $0x30] sm:$0xff] }
 0x24e   : > { %4301 = vst [vmem:[#allocation60_spill] sm:$0xff] %v3722_v19  ;;  %v3727_v56 = vadd.f32 %v817_v21, %v3693_v55 }
 0x24f   : > { %4298 = vst [vmem:[#allocation57_spill] sm:$0xff] %v3706_v27 }
 0x250   : > { %v821_v61 = vpop.f32.mrb[2].mxu0  ;;  %v1181_v59 = vrot.slane %v3727_v56, %v3678_v16 }
 0x251   : > { %v3696_v6 = vadd.f32 %v821_v61, %v3686_v22  ;;  %v823_v52 = vpop.f32.mrb[3].mxu0  ;;  %v684_v61 = vld [vmem:[#allocation11 + $0x40] sm:$0xff] }
 0x253   : > { %v865_v10 = vrot.slane %v3696_v6, %v3678_v16  ;;  %v901_v63 = vrot.slane %v3696_v6, %v3683_v20 }
 0x254   : > { %v827_v12 = vpop.f32.mrb[4].mxu0 }
 0x255   : > { %v3738_v26 = vadd.f32 %v827_v12, %v3686_v22  ;;  %v829_v36 = vpop.f32.mrb[5].mxu0  ;;  %v3754_v12 = vpack.c.bf16 %v687_v11, %v684_v61  ;;  %v875_v21 = vmul.f32 %v865_v10, %v3642_v41  ;;  %v911_v48 = vmul.f32 %v901_v63, %v3607_v7 }
 0x256   : > { %v1217_v11 = vrot.slane %v3727_v56, %v3683_v20  ;;  %v941_v7 = vrot.slane %v3696_v6, %v3708_v46  ;;  %v1257_v63 = vrot.slane %v3727_v56, %v3708_v46  ;;  %v3794_v61 = vadd.f32 %v829_v36, %v3693_v55 }
 0x257   : > { %4304 = vst [vmem:[#allocation63_spill] sm:$0xff] %v3738_v26  ;;  %4308 = vst [vmem:[#allocation67_spill] sm:$0xff] %v3754_v12  ;;  %v869_v4 = vrot.slane %v3738_v26, %v3678_v16  ;;  %v905_v23 = vrot.slane %v3738_v26, %v3683_v20  ;;  %v915_v54 = vadd.f32 %v911_v48, %v875_v21  ;;  %v1088_v12 = vpop.permute.xlu1 %1087 }
 0x258   : > { %v833_v57 = vpop.f32.mrb[6].mxu0  ;;  %v951_v44 = vmul.f32 %v941_v7, %v3634_v38  ;;  %v981_v48 = vrot.slane %v3696_v6, %v3714_v25  ;;  %v1270_v21 = vmul.f32 %v1257_v63, %v3571_v31  ;;  %v985_v41 = vrot.slane %v3738_v26, %v3714_v25 }
 0x259   : > { %v876_v29 = vmul.f32 %v869_v4, %v3615_v18  ;;  %v912_v19 = vmul.f32 %v905_v23, %v3617_v3  ;;  %v835_v10 = vpop.f32.mrb[7].mxu0  ;;  %v3787_v23 = vadd.f32 %v823_v52, %v3693_v55  ;;  %v1008_v3 = vpop.permute.xlu0 %1007  ;;  %v945_v4 = vrot.slane %v3738_v26, %v3708_v46 }
 0x25a   : > { %v3797_v8 = vadd.f32 %v833_v57, %v3686_v22  ;;  %v1194_v18 = vmul.f32 %v1181_v59, %v3638_v40  ;;  %v1230_v52 = vmul.f32 %v1217_v11, %v3551_v42  ;;  %v1025_v36 = vrot.slane %v3738_v26, %v3716_v45 }
 0x25b   : > { %4309 = vst [vmem:[#allocation68_spill] sm:$0xff] %v3787_v23  ;;  %v916_v17 = vadd.f32 %v912_v19, %v876_v29  ;;  %v1021_v57 = vrot.slane %v3696_v6, %v3716_v45  ;;  %v1061_v42 = vrot.slane %v3696_v6, %v3729_v14  ;;  %v952_v29 = vmul.f32 %v945_v4, %v3624_v28  ;;  %v3832_v2 = vpop.permute.xlu1 %1371 }
 0x25c   : > { %v955_v38 = vadd.f32 %v951_v44, %v915_v54  ;;  %v1101_v40 = vrot.slane %v3696_v6, %v3731_v60  ;;  %v1141_v31 = vrot.slane %v3696_v6, %v3733_v34  ;;  %v873_v22 = vrot.slane %v3797_v8, %v3678_v16 }
 0x25d   : > { %v909_v19 = vrot.slane %v3797_v8, %v3683_v20  ;;  %v1189_v59 = vrot.slane %v3794_v61, %v3678_v16  ;;  %v1225_v11 = vrot.slane %v3794_v61, %v3683_v20  ;;  %v956_v28 = vadd.f32 %v952_v29, %v916_v17  ;;  %v1012_v6 = vpop.permute.xlu0 %1011 }
 0x25e   : > { %v1065_v44 = vrot.slane %v3738_v26, %v3729_v14  ;;  %v1105_v54 = vrot.slane %v3738_v26, %v3731_v60  ;;  %v991_v7 = vmul.f32 %v981_v48, %v3658_v47  ;;  %v992_v63 = vmul.f32 %v985_v41, %v3662_v50 }
 0x25f   : > { %v1032_v4 = vmul.f32 %v1025_v36, %v1008_v3  ;;  %v1031_v23 = vmul.f32 %v1021_v57, %v3628_v30  ;;  %v1071_v53 = vmul.f32 %v1061_v42, %v3648_v0  ;;  %v949_v17 = vrot.slane %v3797_v8, %v3708_v46 }
 0x260   : > { %v995_v27 = vadd.f32 %v991_v7, %v955_v38  ;;  %v1196_v29 = vmul.f32 %v1189_v59, %v3611_v62  ;;  %v1232_v26 = vmul.f32 %v1225_v11, %v3613_v58  ;;  %v877_v60 = vmul.f32 %v873_v22, %v3640_v1  ;;  %v3868_v22 = vpop.permute.xlu1 %1051 }
 0x261   : > { %v913_v47 = vmul.f32 %v909_v19, %v3644_v13  ;;  %v989_v50 = vrot.slane %v3797_v8, %v3714_v25  ;;  %v1029_v30 = vrot.slane %v3797_v8, %v3716_v45  ;;  %v996_v41 = vadd.f32 %v992_v63, %v956_v28  ;;  %v1124_v48 = vpop.permute.xlu0 %1123 }
 0x262   : > { %v3847_v0 = vmul.f32 %v1065_v44, %v3676_v15  ;;  %v3849_v3 = vmul.f32 %v1105_v54, %v1088_v12  ;;  %v1265_v62 = vrot.slane %v3794_v61, %v3708_v46  ;;  %v3854_v58 = vadd.f32 %v835_v10, %v3693_v55 }
 0x263   : > { %v3857_v1 = vmul.f32 %v1101_v40, %v3664_v51  ;;  %v3859_v13 = vmul.f32 %v1141_v31, %v1124_v48  ;;  %v1305_v36 = vrot.slane %v3794_v61, %v3714_v25  ;;  %v3864_v15 = vmul.f32 %v949_v17, %v3660_v49  ;;  %v4313_v17 = vld [vmem:[#allocation46_spill] sm:$0xff] }
 0x264   : > { %v1069_v12 = vrot.slane %v3797_v8, %v3729_v14  ;;  %v1236_v57 = vadd.f32 %v1232_v26, %v1196_v29  ;;  %v1234_v42 = vadd.f32 %v1230_v52, %v1194_v18  ;;  %v1035_v38 = vadd.f32 %v1031_v23, %v995_v27 }
 0x265   : > { %v3870_v55 = vadd.f32 %v913_v47, %v877_v60  ;;  %v3873_v51 = vmul.f32 %v989_v50, %v3670_v5  ;;  %v3875_v10 = vmul.f32 %v1029_v30, %v1012_v6  ;;  %v3877_v40 = vadd.f32 %v1032_v4, %v996_v41  ;;  %v3905_v54 = vpop.permute.xlu0 %1447  ;;  %v4314_v30 = vld [vmem:[#allocation43_spill] sm:$0xff]  ;;  %v4315_v41 = vld [vmem:[#allocation62_spill] sm:$0xff] }
 0x266   : > { %v1272_v49 = vmul.f32 %v1265_v62, %v3619_v24  ;;  %v1274_v31 = vadd.f32 %v1270_v21, %v1234_v42  ;;  %v4310_v26 = vrot.slane %v3727_v56, %v3714_v25  ;;  %v1312_v27 = vmul.f32 %v1305_v36, %v3636_v39  ;;  %v4317_v36 = vld [vmem:[#allocation32_spill] sm:$0xff] }
 0x267   : > { %v1345_v60 = vrot.slane %v3794_v61, %v3716_v45  ;;  %v1193_v5 = vrot.slane %v3854_v58, %v3678_v16  ;;  %v1229_v23 = vrot.slane %v3854_v58, %v3683_v20  ;;  %v4311_v24 = vrot.slane %v3727_v56, %v3716_v45 }
 0x268   : > { %v1310_v18 = vmul.f32 %v4310_v26, %v3579_v33  ;;  %v1276_v52 = vadd.f32 %v1272_v49, %v1236_v57  ;;  %v1269_v33 = vrot.slane %v3854_v58, %v3708_v46  ;;  %v4312_v39 = vrot.slane %v3727_v56, %v3729_v14  ;;  %v4318_v57 = vld [vmem:[#allocation57_spill] sm:$0xff] }
 0x269   : > { %v1350_v21 = vmul.f32 %v4311_v24, %v3587_v9  ;;  %v1197_v11 = vmul.f32 %v1193_v5, %v3646_v43  ;;  %v1233_v28 = vmul.f32 %v1229_v23, %v3632_v37  ;;  %v1309_v44 = vrot.slane %v3854_v58, %v3714_v25  ;;  %v3916_v37 = vpop.permute.xlu1 %1127  ;;  %v4320_v49 = vld [vmem:[#allocation49_spill] sm:$0xff]  ;;  %v4323_v5 = vld [vmem:[#allocation38_spill] sm:$0xff] }
 0x26a   : > { %v1314_v19 = vadd.f32 %v1310_v18, %v1274_v31  ;;  %v1390_v59 = vmul.f32 %v4312_v39, %v3591_v35  ;;  %v1457_v9 = vrot.slane %v3727_v56, %v3733_v34  ;;  %v1349_v7 = vrot.slane %v3854_v58, %v3716_v45  ;;  %v4321_v26 = vld [vmem:[#allocation33_spill] sm:$0xff]  ;;  %v4324_v23 = vld [vmem:[#allocation54_spill] sm:$0xff] }
 0x26b   : > { %v1389_v63 = vrot.slane %v3854_v58, %v3729_v14  ;;  %v3913_v35 = vadd.f32 %v1071_v53, %v1035_v38  ;;  %v1352_v43 = vmul.f32 %v1345_v60, %v3735_v32  ;;  %v1237_v4 = vadd.f32 %v1233_v28, %v1197_v11 }
 0x26c   : > { %v1354_v6 = vadd.f32 %v1350_v21, %v1314_v19  ;;  %v1273_v29 = vmul.f32 %v1269_v33, %v4313_v17  ;;  %v1316_v47 = vadd.f32 %v1312_v27, %v1276_v52  ;;  %v4316_v48 = vrot.slane %v3727_v56, %v4315_v41  ;;  %v4325_v33 = vld [vmem:[#allocation34_spill] sm:$0xff] }
 0x26d   : > { %v4319_v42 = vrot.slane %v4318_v57, %v3678_v16  ;;  %v1313_v32 = vmul.f32 %v1309_v44, %v4320_v49  ;;  %v1429_v31 = vrot.slane %v3854_v58, %v4315_v41  ;;  %v4322_v18 = vrot.slane %v4318_v57, %v3683_v20 }
 0x26e   : > { %v1394_v50 = vadd.f32 %v1390_v59, %v1354_v6  ;;  %v1430_v62 = vmul.f32 %v4316_v48, %v4314_v30  ;;  %v1277_v38 = vadd.f32 %v1273_v29, %v1237_v4  ;;  %v1470_v56 = vmul.f32 %v1457_v9, %v4323_v5  ;;  %v1412_v9 = vpop.permute.xlu0 %1411  ;;  %v3947_v4 = vpop.permute.xlu1 %1091  ;;  %v4327_v29 = vld [vmem:[#allocation35_spill] sm:$0xff]  ;;  %v4329_v48 = vld [vmem:[#allocation65_spill] sm:$0xff] }
 0x26f   : > { %v874_v53 = vmul.f32 %v4319_v42, %v4317_v36  ;;  %v910_v27 = vmul.f32 %v4322_v18, %v4321_v26  ;;  %v1353_v52 = vmul.f32 %v1349_v7, %v4324_v23  ;;  %v1393_v19 = vmul.f32 %v1389_v63, %v3832_v2  ;;  %v4331_v42 = vld [vmem:[#allocation68_spill] sm:$0xff] }
 0x270   : > { %v1434_v60 = vadd.f32 %v1430_v62, %v1394_v50  ;;  %v1317_v24 = vadd.f32 %v1313_v32, %v1277_v38  ;;  %v4326_v39 = vrot.slane %v4318_v57, %v3708_v46  ;;  %v1017_v11 = vrot.slane %v4318_v57, %v3716_v45  ;;  %v4332_v26 = vld [vmem:[#allocation36_spill] sm:$0xff] }
 0x271   : > { %v914_v21 = vadd.f32 %v910_v27, %v874_v53  ;;  %v1356_v28 = vadd.f32 %v1352_v43, %v1316_v47  ;;  %v1385_v44 = vrot.slane %v3794_v61, %v3729_v14  ;;  %v1057_v7 = vrot.slane %v4318_v57, %v3729_v14  ;;  %v4330_v47 = vld [vmem:[#allocation52_spill] sm:$0xff] }
 0x272   : > { %v950_v59 = vmul.f32 %v4326_v39, %v4325_v33  ;;  %v1474_v6 = vadd.f32 %v1470_v56, %v1434_v60  ;;  %v1357_v2 = vadd.f32 %v1353_v52, %v1317_v24  ;;  %v1433_v63 = vmul.f32 %v1429_v31, %v1412_v9  ;;  %v4333_v60 = vld [vmem:[#allocation39_spill] sm:$0xff]  ;;  %v4334_v52 = vld [vmem:[#allocation40_spill] sm:$0xff]  ;;  %v4335_v33 = vld [vmem:[#allocation50_spill] sm:$0xff] }
 0x273   : > { %v4328_v50 = vrot.slane %v4318_v57, %v3714_v25  ;;  %v1030_v62 = vmul.f32 %v1017_v11, %v4330_v47  ;;  %v1097_v36 = vrot.slane %v4318_v57, %v4315_v41  ;;  %v1185_v53 = vrot.slane %v4331_v42, %v3678_v16  ;;  %v4336_v11 = vld [vmem:[#allocation37_spill] sm:$0xff] }
 0x274   : > { %v954_v17 = vadd.f32 %v950_v59, %v914_v21  ;;  %v1490_v43 = vadd.f32 %v4329_v48, %v1474_v6  ;;  %v1397_v38 = vadd.f32 %v1393_v19, %v1357_v2  ;;  %v1221_v32 = vrot.slane %v4331_v42, %v3683_v20 }
 0x275   : > { %v990_v30 = vmul.f32 %v4328_v50, %v4327_v29  ;;  %v1261_v31 = vrot.slane %v4331_v42, %v3708_v46  ;;  %v1070_v18 = vmul.f32 %v1057_v7, %v4332_v26  ;;  %v1137_v27 = vrot.slane %v4318_v57, %v3733_v34  ;;  %v4337_v7 = vld [vmem:[#allocation41_spill] sm:$0xff] }
 0x276   : > { %1577 = vmatprep.mubr.f32.mxu1 %v1490_v43  ;;  %1666 = vmatprep.mubr.f32.mxu0 %v1490_v43  ;;  %v1195_v5 = vmul.f32 %v1185_v53, %v4333_v60  ;;  %v1437_v56 = vadd.f32 %v1433_v63, %v1397_v38  ;;  %v1231_v19 = vmul.f32 %v1221_v32, %v4334_v52  ;;  %v4339_v43 = vld [vmem:[#allocation47_spill] sm:$0xff]  ;;  %v4341_v32 = vld [vmem:[#allocation53_spill] sm:$0xff] }
 0x277   : > { %v994_v49 = vadd.f32 %v990_v30, %v954_v17  ;;  %v1301_v24 = vrot.slane %v4331_v42, %v3714_v25  ;;  %v957_v21 = vadd.f32 %v3864_v15, %v3870_v55  ;;  %v1392_v39 = vmul.f32 %v1385_v44, %v4335_v33  ;;  %v1452_v17 = vpop.permute.xlu1 %1451  ;;  %v4338_v15 = vld [vmem:[#allocation44_spill] sm:$0xff]  ;;  %v4343_v52 = vld [vmem:[#allocation45_spill] sm:$0xff] }
 0x278   : > { %v1425_v59 = vrot.slane %v3794_v61, %v4315_v41  ;;  %v1110_v6 = vmul.f32 %v1097_v36, %v4336_v11  ;;  %v1235_v9 = vadd.f32 %v1231_v19, %v1195_v5  ;;  %v1271_v2 = vmul.f32 %v1261_v31, %v4337_v7  ;;  %v4340_v36 = vld [vmem:[#allocation66_spill] sm:$0xff]  ;;  %v693_v33 = vld [vmem:[#allocation11 + $0x88] sm:$0xff]  ;;  %v4347_v7 = vld [vmem:[#allocation55_spill] sm:$0xff] }
 0x279   : > { %v1034_v23 = vadd.f32 %v1030_v62, %v994_v49  ;;  %v1341_v63 = vrot.slane %v4331_v42, %v3716_v45  ;;  %v1396_v29 = vadd.f32 %v1392_v39, %v1356_v28  ;;  %v1465_v25 = vrot.slane %v3794_v61, %v3733_v34  ;;  %v4345_v11 = vld [vmem:[#allocation48_spill] sm:$0xff] }
 0x27a   : > { %v1150_v55 = vmul.f32 %v1137_v27, %v4338_v15  ;;  %v1469_v44 = vrot.slane %v3854_v58, %v3733_v34  ;;  %v1275_v30 = vadd.f32 %v1271_v2, %v1235_v9  ;;  %v1311_v47 = vmul.f32 %v1301_v24, %v4339_v43  ;;  %v4346_v9 = vld [vmem:[#allocation56_spill] sm:$0xff]  ;;  %v691_v43 = vld [vmem:[#allocation11 + $0x78] sm:$0xff] }
 0x27b   : > { %v1074_v57 = vadd.f32 %v1070_v18, %v1034_v23  ;;  %v1381_v62 = vrot.slane %v4331_v42, %v3729_v14  ;;  %v1076_v45 = vadd.f32 %v3847_v0, %v3877_v40  ;;  %v997_v28 = vadd.f32 %v3873_v51, %v957_v21  ;;  %v689_v0 = vld [vmem:[#allocation11 + $0x68] sm:$0xff]  ;;  %v692_v51 = vld [vmem:[#allocation11 + $0x80] sm:$0xff]  ;;  %v690_v21 = vld [vmem:[#allocation11 + $0x70] sm:$0xff] }
 0x27c   : > { %v1432_v53 = vmul.f32 %v1425_v59, %v4340_v36  ;;  %v1473_v61 = vmul.f32 %v1469_v44, %v1452_v17  ;;  %v1315_v49 = vadd.f32 %v1311_v47, %v1275_v30  ;;  %v1351_v31 = vmul.f32 %v1341_v63, %v4341_v32  ;;  %v4342_v40 = vld [vmem:[#allocation64_spill] sm:$0xff]  ;;  %v688_v30 = vld [vmem:[#allocation11 + $0x60] sm:$0xff] }
 0x27d   : > { %v1114_v50 = vadd.f32 %v1110_v6, %v1074_v57  ;;  %v1421_v58 = vrot.slane %v4331_v42, %v4315_v41  ;;  %v1115_v26 = vadd.f32 %v3857_v1, %v3913_v35  ;;  %v1472_v27 = vmul.f32 %v1465_v25, %v3905_v54  ;;  %v4344_v54 = vld [vmem:[#allocation63_spill] sm:$0xff]  ;;  %v4352_v25 = vld [vmem:[#allocation58_spill] sm:$0xff]  ;;  %v4356_v36 = vld [vmem:[#allocation60_spill] sm:$0xff] }
 0x27e   : > { %v1436_v18 = vadd.f32 %v1432_v53, %v1396_v29  ;;  %v3997_v60 = vadd.f32 %v1473_v61, %v1437_v56  ;;  %v1355_v23 = vadd.f32 %v1351_v31, %v1315_v49  ;;  %v1391_v19 = vmul.f32 %v1381_v62, %v4343_v52  ;;  %v4351_v29 = vld [vmem:[#allocation59_spill] sm:$0xff]  ;;  %v1132_v62 = vpop.permute.xlu0 %1131  ;;  %v698_v61 = vld [vmem:[#allocation11 + $0xb0] sm:$0xff]  ;;  %v699_v49 = vld [vmem:[#allocation11 + $0xb8] sm:$0xff] }
 0x27f   : > { %v1154_v38 = vadd.f32 %v1150_v55, %v1114_v50  ;;  %v1461_v24 = vrot.slane %v4331_v42, %v3733_v34  ;;  %v1037_v39 = vadd.f32 %v3875_v10, %v997_v28  ;;  %v1073_v1 = vmul.f32 %v1069_v12, %v3868_v22  ;;  %v4349_v12 = vld [vmem:[#allocation42_spill] sm:$0xff]  ;;  %v4354_v55 = vld [vmem:[#allocation67_spill] sm:$0xff]  ;;  %v4355_v28 = vld [vmem:[#allocation61_spill] sm:$0xff] }
 0x280   : > { %v1145_v35 = vrot.slane %v4344_v54, %v3733_v34  ;;  %v1109_v56 = vrot.slane %v3797_v8, %v4315_v41  ;;  %v1395_v59 = vadd.f32 %v1391_v19, %v1355_v23  ;;  %v1431_v42 = vmul.f32 %v1421_v58, %v4345_v11  ;;  %v4350_v41 = vld [vmem:[#allocation51_spill] sm:$0xff]  ;;  %v702_v23 = vld [vmem:[#allocation11 + $0xd0] sm:$0xff]  ;;  %v705_v52 = vld [vmem:[#allocation11 + $0xe8] sm:$0xff] }
 0x281   : > { %v1489_v5 = vadd.f32 %v4342_v40, %v1154_v38  ;;  %v2458_v6 = vpack.c.bf16 %v692_v51, %v689_v0  ;;  %v1116_v57 = vadd.f32 %v3849_v3, %v1076_v45  ;;  %v1155_v10 = vadd.f32 %v3859_v13, %v1115_v26  ;;  %v695_v45 = vld [vmem:[#allocation11 + $0x98] sm:$0xff]  ;;  %v696_v38 = vld [vmem:[#allocation11 + $0xa0] sm:$0xff]  ;;  %v697_v0 = vld [vmem:[#allocation11 + $0xa8] sm:$0xff] }
 0x282   : > { %v4348_v14 = vpack.c.bf16 %v4346_v9, %v4347_v7  ;;  %v2490_v22 = vpack.c.bf16 %v693_v33, %v690_v21  ;;  %v1476_v2 = vadd.f32 %v1472_v27, %v1436_v18  ;;  %v1435_v63 = vadd.f32 %v1431_v42, %v1395_v59  ;;  %v694_v27 = vld [vmem:[#allocation11 + $0x90] sm:$0xff]  ;;  %v701_v51 = vld [vmem:[#allocation11 + $0xc8] sm:$0xff]  ;;  %v700_v54 = vld [vmem:[#allocation11 + $0xc0] sm:$0xff] }
 0x283   : > { %1578 = vmatmul.mubr.f32.vlgmr.msra.gmra.mrb[0].mxu1 %v1489_v5  ;;  %1667 = vmatmul.mubr.f32.vlgmr.msra.gmra.mrb[8].mxu0 %v1489_v5  ;;  %v1471_v17 = vmul.f32 %v1461_v24, %v4350_v41  ;;  %v4353_v15 = vpack.c.bf16 %v4351_v29, %v4352_v25  ;;  %v1077_v3 = vadd.f32 %v1073_v1, %v1037_v39  ;;  %v704_v5 = vld [vmem:[#allocation11 + $0xe0] sm:$0xff]  ;;  %v710_v59 = vld [vmem:[#allocation11 + $0x110] sm:$0xff]  ;;  %v711_v42 = vld [vmem:[#allocation11 + $0x118] sm:$0xff] }
 0x284   : > { %2453 = vmatpush1.bf16.msra.mxu1 %v4348_v14  ;;  %2485 = vmatpush3.bf16.msra.mxu0 %v4349_v12  ;;  %v1152_v13 = vmul.f32 %v1145_v35, %v3916_v37  ;;  %v1113_v44 = vmul.f32 %v1109_v56, %v3947_v4  ;;  %v1149_v50 = vrot.slane %v3797_v8, %v3733_v34  ;;  %v703_v35 = vld [vmem:[#allocation11 + $0xd8] sm:$0xff]  ;;  %v708_v11 = vld [vmem:[#allocation11 + $0x100] sm:$0xff]  ;;  %v709_v9 = vld [vmem:[#allocation11 + $0x108] sm:$0xff] }
 0x285   : > { %2455 = vmatprep.subr.bf16.mxu1 %v4353_v15  ;;  %2487 = vmatprep.subr.bf16.mxu0 %v4354_v55  ;;  %v1475_v47 = vadd.f32 %v1471_v17, %v1435_v63  ;;  %v4357_v53 = vpack.c.bf16 %v4355_v28, %v4356_v36  ;;  %v1494_v4 = vadd.f32 %v4329_v48, %v1476_v2  ;;  %v707_v56 = vld [vmem:[#allocation11 + $0xf8] sm:$0xff]  ;;  %v713_v7 = vld [vmem:[#allocation11 + $0x128] sm:$0xff]  ;;  %v716_v14 = vld [vmem:[#allocation11 + $0x140] sm:$0xff]  ;;  %v4359_v63 = vmov 0.0  }
 0x286   : > { %v2460_v34 = vpack.c.bf16 %v691_v43, %v688_v30  ;;  %v1156_v8 = vadd.f32 %v1152_v13, %v1116_v57  ;;  %v1117_v32 = vadd.f32 %v1113_v44, %v1077_v3  ;;  %v1153_v31 = vmul.f32 %v1149_v50, %v1132_v62  ;;  %v714_v12 = vld [vmem:[#allocation11 + $0x130] sm:$0xff]  ;;  %v4358_v2 = vld [vmem:[#allocation28_spill] sm:$0xff]  ;;  %v712_v29 = vld [vmem:[#allocation11 + $0x120] sm:$0xff] }
 0x287   : > { %v1492_v37 = vadd.f32 %v4329_v48, %v1475_v47  ;;  %v1491_v58 = vadd.f32 %v4342_v40, %v1155_v10  ;;  %v2462_v26 = vpack.c.bf16 %v698_v61, %v695_v45  ;;  %v2494_v18 = vpack.c.bf16 %v699_v49, %v696_v38  ;;  %v706_v10 = vld [vmem:[#allocation11 + $0xf0] sm:$0xff]  ;;  %v715_v25 = vld [vmem:[#allocation11 + $0x138] sm:$0xff]  ;;  %v720_v3 = vld [vmem:[#allocation11 + $0x160] sm:$0xff] }
 0x288   : > { %2457 = vmatpush1.bf16.msra.mxu1 %v4357_v53  ;;  %2489 = vmatpush3.bf16.msra.mxu0 %v4354_v55  ;;  %v1496_v19 = vadd.f32 %v4329_v48, %v3997_v60  ;;  %v1157_v24 = vadd.f32 %v1153_v31, %v1117_v32  ;;  %v1493_v21 = vadd.f32 %v4342_v40, %v1156_v8  ;;  %v719_v15 = vld [vmem:[#allocation11 + $0x158] sm:$0xff]  ;;  %v722_v55 = vld [vmem:[#allocation11 + $0x170] sm:$0xff]  ;;  %v721_v47 = vld [vmem:[#allocation11 + $0x168] sm:$0xff] }
 0x289   : > { %2459 = vmatprep.subr.bf16.mxu1 %v2458_v6  ;;  %2491 = vmatprep.subr.bf16.mxu0 %v2490_v22  ;;  %v2464_v33 = vpack.c.bf16 %v697_v0, %v694_v27  ;;  %v2466_v39 = vpack.c.bf16 %v704_v5, %v701_v51  ;;  %v2498_v1 = vpack.c.bf16 %v705_v52, %v702_v23  ;;  %v723_v13 = vld [vmem:[#allocation11 + $0x178] sm:$0xff]  ;;  %v718_v43 = vld [vmem:[#allocation11 + $0x150] sm:$0xff]  ;;  %v4363_v36 = vld [vmem:[#allocation31_spill] sm:$0xff] }
 0x28a   : > { %1583 = vmatprep.mubr.f32.mxu1 %v1492_v37  ;;  %1671 = vmatprep.mubr.f32.mxu0 %v1492_v37  ;;  %v1495_v48 = vadd.f32 %v4342_v40, %v1157_v24  ;;  %v2468_v60 = vpack.c.bf16 %v703_v35, %v700_v54  ;;  %v2470_v6 = vpack.c.bf16 %v710_v59, %v707_v56  ;;  %v4360_v45 = vld [vmem:[#allocation30_spill] sm:$0xff]  ;;  %v4361_v28 = vld [vmem:[#allocation29_spill] sm:$0xff] }
 0x28b   : > { %1584 = vmatmul.mubr.f32.gmra.mrb[2].mxu1 %v1491_v58  ;;  %1672 = vmatmul.mubr.f32.gmra.mrb[10].mxu0 %v1491_v58  ;;  %v2502_v57 = vpack.c.bf16 %v711_v42, %v708_v11  ;;  %v2472_v40 = vpack.c.bf16 %v709_v9, %v706_v10  ;;  %v2474_v41 = vpack.c.bf16 %v716_v14, %v713_v7 }
 0x28c   : > { %1589 = vmatprep.mubr.f32.mxu1 %v1494_v4  ;;  %1676 = vmatprep.mubr.f32.mxu0 %v1494_v4  ;;  %v2476_v44 = vpack.c.bf16 %v715_v25, %v712_v29  ;;  %v2478_v50 = vpack.c.bf16 %v722_v55, %v719_v15  ;;  %v2510_v30 = vpack.c.bf16 %v723_v13, %v720_v3 }
 0x28d   : > { %2461 = vmatpush1.bf16.msra.mxu1 %v2460_v34  ;;  %2493 = vmatpush3.bf16.msra.mxu0 %v2490_v22  ;;  %v717_v22 = vld [vmem:[#allocation11 + $0x148] sm:$0xff]  ;;  %v2480_v62 = vpack.c.bf16 %v721_v47, %v718_v43 }
 0x28e   : > { %2463 = vmatprep.subr.bf16.mxu1 %v2462_v26  ;;  %2495 = vmatprep.subr.bf16.mxu0 %v2494_v18  ;;  %v2506_v17 = vpack.c.bf16 %v717_v22, %v714_v12 }
 0x28f   : > { %1590 = vmatmul.mubr.f32.gmra.mrb[4].mxu1 %v1493_v21  ;;  %1677 = vmatmul.mubr.f32.gmra.mrb[12].mxu0 %v1493_v21 }
 0x290   : > { %1595 = vmatprep.mubr.f32.mxu1 %v1496_v19  ;;  %1681 = vmatprep.mubr.f32.mxu0 %v1496_v19 }
 0x291   : > { %2465 = vmatpush1.bf16.msra.mxu1 %v2464_v33  ;;  %2497 = vmatpush3.bf16.msra.mxu0 %v2494_v18 }
 0x292   : > { %2467 = vmatprep.subr.bf16.mxu1 %v2466_v39  ;;  %2499 = vmatprep.subr.bf16.mxu0 %v2498_v1 }
 0x293   : > { %1596 = vmatmul.mubr.f32.gmra.mrb[6].mxu1 %v1495_v48  ;;  %1682 = vmatmul.mubr.f32.gmra.mrb[14].mxu0 %v1495_v48 }
 0x294   : > { %2316 = vmatprep.mubr.f32.mxu0 %v4358_v2  ;;  %1767 = vmatprep.mubr.f32.mxu1 %v4359_v63 }
 0x295   : > { %2469 = vmatpush1.bf16.msra.mxu1 %v2468_v60  ;;  %2501 = vmatpush3.bf16.msra.mxu0 %v2498_v1 }
 0x296   : > { %2471 = vmatprep.subr.bf16.mxu1 %v2470_v6  ;;  %2503 = vmatprep.subr.bf16.mxu0 %v2502_v57 }
 0x299   : > { %2473 = vmatpush1.bf16.msra.mxu1 %v2472_v40  ;;  %2505 = vmatpush3.bf16.msra.mxu0 %v2502_v57 }
 0x29a   : > { %2475 = vmatprep.subr.bf16.mxu1 %v2474_v41  ;;  %2507 = vmatprep.subr.bf16.mxu0 %v2506_v17 }
 0x29d   : > { %2477 = vmatpush1.bf16.msra.mxu1 %v2476_v44  ;;  %2509 = vmatpush3.bf16.msra.mxu0 %v2506_v17 }
 0x29e   : > { %2479 = vmatprep.subr.bf16.mxu1 %v2478_v50  ;;  %2511 = vmatprep.subr.bf16.mxu0 %v2510_v30 }
 0x2a1   : > { %2481 = vmatpush1.bf16.msra.mxu1 %v2480_v62  ;;  %2513 = vmatpush3.bf16.msra.mxu0 %v2510_v30 }
 0x2a4   : > { %1768 = vmatmul.mubr.f32.vlgmr.msra.gmra.mrb[0].mxu1 %v4358_v2  ;;  %2317 = vmatmul.mubr.f32.vlgmr.msra.gmra.mrb[16].mxu0 %v4360_v45 }
 0x2a5   : > { %2319 = vmatprep.mubr.f32.mxu0 %v4361_v28  ;;  %1773 = vmatprep.mubr.f32.mxu1 %v4359_v63 }
 0x2a8   : > { %1774 = vmatmul.mubr.f32.gmra.mrb[2].mxu1 %v4360_v45  ;;  %2320 = vmatmul.mubr.f32.gmra.mrb[18].mxu0 %v4363_v36 }
 0x2a9   : > { %1779 = vmatprep.mubr.f32.mxu1 %v4359_v63 }
 0x2ac   : > { %1780 = vmatmul.mubr.f32.gmra.mrb[4].mxu1 %v4361_v28 }
 0x2ad   : > { %1785 = vmatprep.mubr.f32.mxu1 %v4359_v63 }
 0x2b0   : > { %1786 = vmatmul.mubr.f32.gmra.mrb[6].mxu1 %v4363_v36 }
 0x2b1   : > { %2930 = shalt.err (!%p2927_p0)
}
 0x2b2   : > { %s2931_s19 = scalar_lea.hbm %s4056_s3, 64  ;;  %s2935_s20 = scalar_lea.hbm %s4364_s28, 128 }
 0x2b3   : > { %p2932_p8 = scmp.ne.s32.totalorder %s4056_s3, %s2931_s19  ;;  %p2936_p5 = scmp.lt.u32.totalorder %s4056_s3, %s4364_s28 }
 0x2b4   : > { %p2937_p12 = scmp.lt.u32.totalorder %s2935_s20, %s2931_s19  ;;  %p2939_p7 = scmp.lt.u32.totalorder %s2931_s19, %s4056_s3 }
 0x2b5   : > { %p2933_p1 = pnand %p2932_p8, %p4365_p11 }
 0x2b6   : > { %p2938_p3 = por %p2937_p12, %p2936_p5 }
 0x2b7   : > { %p2934_p13 = pneg %p2933_p1 }
 0x2b8   : > { %p2940_p6 = por %p2939_p7, %p2938_p3 }
 0x2ba   : > { %p2941_p2 = pnand %p2940_p6, %p2934_p13 }
 0x2bc   : > { %2944 = shalt.err (!%p2941_p2)
}
 0x2bd   : > { %s3051_s14 = smov 16   ;;  %s3052_s22 = smov 1  }
 0x2be   : > { %2557 = dma.vmem_to_hbm [thread:$0]  (%p4365_p11), %s4058_s1, 64, %s4056_s3, %s1967_s15, %s3051_s14, %s3051_s14, %s3052_s22  }
 0x2bf   : > { %s4366_s12 = sld [smem:[#allocation72_spill]]  ;;  %s475_s15 = scalar_lea.vmem [#allocation13], %s3377_s16 }
 0x2c0   : > { %s2218_s29 = sshll.u32 %s3127_s13, 9  ;;  %s1980_s17 = sshll.u32 %s475_s15, 4  ;;  %s4122_s17 = int_to_ptr.vmem [resolvable:$true] %s1980_s17 }
 0x2c1   : > { %s4368_s23 = sld [smem:[#allocation73_spill]]  ;;  %s1962_s26 = scalar_lea.sflag [#allocation4], %s3374_s27 }
 0x2c2   : > { %s2945_s6 = scalar_lea.vmem %s4122_s17, 512  ;;  %s3053_s13 = smov [#allocation13]  }
 0x2c3   : > { %p2946_p9 = scmp.ne.s32.totalorder %s4122_s17, %s2945_s6  ;;  %s2949_s20 = sshll.u32 %s3053_s13, 4  ;;  %s2950_s20 = int_to_ptr.vmem [resolvable:$false] %s2949_s20 }
 0x2c4   : > { %s2951_s21 = scalar_lea.vmem %s2950_s20, 1024  ;;  %p2952_p0 = scmp.lt.s32.totalorder %s4122_s17, %s2950_s20 }
 0x2c5   : > { %s4367_s25 = smov %s4366_s12  ;;  %v2198_v18 = vld [vmem:[%s4366_s12 + $0x1] ss:$2 sm:$0x7]  ;;  %p2947_p10 = pnand %p2946_p9, %p4365_p11 }
 0x2c6   : > { %v727_v27 = vld [vmem:[%s4367_s25] ss:$2 sm:$0x7]  ;;  %v1691_v51 = vrot.slane %v2198_v18, %v3678_v16  ;;  %v1695_v24 = vrot.slane %v2198_v18, %v3683_v20  ;;  %v1699_v13 = vrot.slane %v2198_v18, %v3708_v46  ;;  %p2953_p8 = scmp.lt.s32.totalorder %s2951_s21, %s2945_s6 }
 0x2c7   : > { %v1501_v0 = vrot.slane %v727_v27, %v3678_v16  ;;  %v1505_v19 = vrot.slane %v727_v27, %v3683_v20  ;;  %v1509_v50 = vrot.slane %v727_v27, %v3708_v46  ;;  %s4120_s19 = scalar_lea.hbm %s4368_s23, %s2218_s29  ;;  %p2948_p4 = pneg %p2947_p10 }
 0x2c8   : > { %p2954_p1 = por %p2953_p8, %p2952_p0 }
 0x2c9   : > { %v2514_v5 = vadd.f32 %v1691_v51, %v1501_v0  ;;  %v2516_v54 = vadd.f32 %v1695_v24, %v1505_v19 }
 0x2ca   : > { %p2955_p13 = pnand %p2954_p1, %p2948_p4 }
 0x356   : > { %v2252_v53 = vpop.f32.mrb[8].mxu0 }
 0x357   : > { %v2253_v61 = vpop.f32.mrb[9].mxu0 }
 0x358   : > { %v4084_v38 = vadd.f32 %v2253_v61, %v2252_v53 }
 0x35e   : > { %v2255_v49 = vpop.f32.mrb[10].mxu0 }
 0x35f   : > { %v2256_v37 = vpop.f32.mrb[11].mxu0 }
 0x360   : > { %v4086_v4 = vadd.f32 %v2256_v37, %v2255_v49  ;;  %v1669_v49 = vadd.f32 %v4084_v38, %v1509_v50 }
 0x362   : > { %v2258_v34 = vpop.f32.mrb[12].mxu0  ;;  %v1674_v46 = vadd.f32 %v4086_v4, %v1509_v50 }
 0x363   : > { %v2259_v8 = vpop.f32.mrb[13].mxu0 }
 0x364   : > { %v4088_v32 = vadd.f32 %v2259_v8, %v2258_v34 }
 0x366   : > { %v2261_v31 = vpop.f32.mrb[14].mxu0  ;;  %v1679_v38 = vadd.f32 %v4088_v32, %v1509_v50 }
 0x367   : > { %v2262_v58 = vpop.f32.mrb[15].mxu0 }
 0x368   : > { %v4090_v26 = vadd.f32 %v2262_v58, %v2261_v31 }
 0x36a   : > { %v1684_v4 = vadd.f32 %v4090_v26, %v1509_v50 }
 0x377   : > { %v1769_v23 = vpop.f32.mrb[0].mxu1  ;;  %v2318_v52 = vpop.f32.mrb[16].mxu0 }
 0x378   : > { %v2515_v21 = vadd.f32 %v2514_v5, %v1769_v23  ;;  %v1771_v33 = vpop.f32.mrb[1].mxu1  ;;  %v1858_v39 = vpop.f32.mrb[17].mxu0  ;;  %v1864_v8 = vadd.f32 %v2318_v52, %v1699_v13 }
 0x379   : > { %v2517_v48 = vadd.f32 %v2516_v54, %v1771_v33  ;;  %v1859_v62 = vadd.f32 %v1858_v39, %v1699_v13 }
 0x37a   : > { %v2199_v1 = vmul.f32 -1.442695, %v2515_v21 }
 0x37b   : > { %v1775_v35 = vpop.f32.mrb[2].mxu1  ;;  %v4102_v56 = vpop.f32.mrb[18].mxu0  ;;  %v2203_v20 = vmul.f32 -1.442695, %v2517_v48 }
 0x37c   : > { %2703 = vpow2.f32 %v2199_v1  ;;  %v2519_v59 = vadd.f32 %v2514_v5, %v1775_v35  ;;  %v1777_v11 = vpop.f32.mrb[3].mxu1  ;;  %v1868_v42 = vpop.f32.mrb[19].mxu0  ;;  %v1874_v52 = vadd.f32 %v4102_v56, %v1699_v13 }
 0x37d   : > { %v2521_v7 = vadd.f32 %v2516_v54, %v1777_v11  ;;  %v1869_v23 = vadd.f32 %v1868_v42, %v1699_v13 }
 0x37e   : > { %v2200_v16 = vmul.f32 -1.442695, %v2519_v59 }
 0x37f   : > { %v1781_v60 = vpop.f32.mrb[4].mxu1  ;;  %v2204_v41 = vmul.f32 -1.442695, %v2521_v7 }
 0x380   : > { %2705 = vpow2.f32 %v2200_v16  ;;  %v2523_v6 = vadd.f32 %v2514_v5, %v1781_v60  ;;  %v1783_v57 = vpop.f32.mrb[5].mxu1 }
 0x381   : > { %v2525_v17 = vadd.f32 %v2516_v54, %v1783_v57 }
 0x382   : > { %v2201_v10 = vmul.f32 -1.442695, %v2523_v6 }
 0x383   : > { %v1787_v9 = vpop.f32.mrb[6].mxu1  ;;  %v2205_v15 = vmul.f32 -1.442695, %v2525_v17 }
 0x384   : > { %2707 = vpow2.f32 %v2201_v10  ;;  %v2527_v14 = vadd.f32 %v2514_v5, %v1787_v9  ;;  %v1789_v12 = vpop.f32.mrb[7].mxu1 }
 0x385   : > { %2709 = vpow2.f32 %v2203_v20  ;;  %v2529_v55 = vadd.f32 %v2516_v54, %v1789_v12 }
 0x386   : > { %v2704_v22 = vpop.eup %2703  ;;  %v2202_v63 = vmul.f32 -1.442695, %v2527_v14 }
 0x387   : > { %v1893_v40 = vadd.f32 1.0, %v2704_v22  ;;  %v2206_v30 = vmul.f32 -1.442695, %v2529_v55 }
 0x388   : > { %2711 = vpow2.f32 %v2202_v63 }
 0x389   : > { %2713 = vrcp.f32 %v1893_v40 }
 0x38a   : > { %v2706_v29 = vpop.eup %2705  ;;  %2715 = vpow2.f32 %v2204_v41 }
 0x38b   : > { %v1894_v25 = vadd.f32 1.0, %v2706_v29 }
 0x38d   : > { %2717 = vrcp.f32 %v1894_v25 }
 0x38e   : > { %v2708_v3 = vpop.eup %2707  ;;  %2719 = vpow2.f32 %v2205_v15 }
 0x38f   : > { %v1895_v44 = vadd.f32 1.0, %v2708_v3  ;;  %v2710_v43 = vpop.eup %2709 }
 0x390   : > { %v1921_v31 = vadd.f32 1.0, %v2710_v43 }
 0x391   : > { %2721 = vrcp.f32 %v1895_v44 }
 0x392   : > { %v2712_v47 = vpop.eup %2711  ;;  %2723 = vpow2.f32 %v2206_v30 }
 0x393   : > { %v2714_v53 = vpop.eup %2713  ;;  %v1896_v61 = vadd.f32 1.0, %v2712_v47 }
 0x394   : > { %v1933_v37 = vmul.f32 %v2714_v53, %v1859_v62  ;;  %v2716_v34 = vpop.eup %2715 }
 0x395   : > { %2725 = vrcp.f32 %v1896_v61  ;;  %v1922_v5 = vadd.f32 1.0, %v2716_v34 }
 0x396   : > { %v1937_v58 = vadd.f32 %v1933_v37, %v1669_v49 }
 0x397   : > { %v2718_v18 = vpop.eup %2717 }
 0x398   : > { %2727 = vtanh.f32 %v1937_v58  ;;  %v1934_v27 = vmul.f32 %v2718_v18, %v1864_v8  ;;  %v2720_v0 = vpop.eup %2719 }
 0x399   : > { %2729 = vrcp.f32 %v1921_v31  ;;  %v1923_v39 = vadd.f32 1.0, %v2720_v0 }
 0x39a   : > { %v1938_v51 = vadd.f32 %v1934_v27, %v1674_v46 }
 0x39b   : > { %v2722_v19 = vpop.eup %2721 }
 0x39c   : > { %2731 = vtanh.f32 %v1938_v51  ;;  %v1935_v24 = vmul.f32 %v2722_v19, %v1869_v23  ;;  %v2724_v21 = vpop.eup %2723 }
 0x39d   : > { %2733 = vrcp.f32 %v1922_v5  ;;  %v1924_v11 = vadd.f32 1.0, %v2724_v21 }
 0x39e   : > { %v1939_v33 = vadd.f32 %v1935_v24, %v1679_v38 }
 0x39f   : > { %v2726_v1 = vpop.eup %2725 }
 0x3a0   : > { %2735 = vtanh.f32 %v1939_v33  ;;  %v1936_v54 = vmul.f32 %v2726_v1, %v1874_v52 }
 0x3a1   : > { %2737 = vrcp.f32 %v1923_v39 }
 0x3a2   : > { %v2728_v35 = vpop.eup %2727  ;;  %v1940_v59 = vadd.f32 %v1936_v54, %v1684_v4 }
 0x3a3   : > { %v1945_v32 = vsub.f32 %v4358_v2, %v2728_v35  ;;  %v2730_v42 = vpop.eup %2729 }
 0x3a4   : > { %2739 = vtanh.f32 %v1940_v59 }
 0x3a5   : > { %v1949_v16 = vmul.f32 %v2730_v42, %v1945_v32  ;;  %2741 = vrcp.f32 %v1924_v11 }
 0x3a6   : > { %v2732_v48 = vpop.eup %2731 }
 0x3a7   : > { %v1953_v56 = vadd.f32 %v2728_v35, %v1949_v16  ;;  %v1946_v60 = vsub.f32 %v4360_v45, %v2732_v48  ;;  %v2734_v6 = vpop.eup %2733 }
 0x3a9   : > { %1957 = vst [vmem:[%s475_s15] sm:$0xff] %v1953_v56  ;;  %v1950_v26 = vmul.f32 %v2734_v6, %v1946_v60 }
 0x3aa   : > { %v2736_v57 = vpop.eup %2735 }
 0x3ab   : > { %v1954_v10 = vadd.f32 %v2732_v48, %v1950_v26  ;;  %v1947_v20 = vsub.f32 %v4361_v28, %v2736_v57  ;;  %v2738_v9 = vpop.eup %2737 }
 0x3ad   : > { %1958 = vst [vmem:[%s475_s15 + $0x8] sm:$0xff] %v1954_v10  ;;  %v1951_v2 = vmul.f32 %v2738_v9, %v1947_v20 }
 0x3ae   : > { %v2740_v7 = vpop.eup %2739 }
 0x3af   : > { %v1955_v14 = vadd.f32 %v2736_v57, %v1951_v2  ;;  %v1948_v12 = vsub.f32 %v4363_v36, %v2740_v7  ;;  %v2742_v45 = vpop.eup %2741 }
 0x3b1   : > { %1959 = vst [vmem:[%s475_s15 + $0x10] sm:$0xff] %v1955_v14  ;;  %v1952_v22 = vmul.f32 %v2742_v45, %v1948_v12 }
 0x3b3   : > { %v1956_v28 = vadd.f32 %v2740_v7, %v1952_v22 }
 0x3b5   : > { %1960 = vst [vmem:[%s475_s15 + $0x18] sm:$0xff] %v1956_v28 }
 0x3b6   : > { %2958 = shalt.err (!%p2955_p13)
}
 0x3b7   : > { %s2959_s24 = scalar_lea.hbm %s4120_s19, 512  ;;  %s2963_s8 = scalar_lea.hbm %s4368_s23, 1024 }
 0x3b8   : > { %p2960_p5 = scmp.ne.s32.totalorder %s4120_s19, %s2959_s24  ;;  %p2964_p7 = scmp.lt.u32.totalorder %s4120_s19, %s4368_s23 }
 0x3b9   : > { %p2965_p6 = scmp.lt.u32.totalorder %s2963_s8, %s2959_s24  ;;  %p2967_p9 = scmp.lt.u32.totalorder %s2959_s24, %s4120_s19 }
 0x3ba   : > { %p2961_p12 = pnand %p2960_p5, %p4365_p11 }
 0x3bb   : > { %p2966_p2 = por %p2965_p6, %p2964_p7 }
 0x3bc   : > { %p2962_p3 = pneg %p2961_p12 }
 0x3bd   : > { %p2968_p10 = por %p2967_p9, %p2966_p2 }
 0x3bf   : > { %p2969_p4 = pnand %p2968_p10, %p2962_p3 }
 0x3c1   : > { %2972 = shalt.err (!%p2969_p4)
}
 0x3c2   : > { %s3054_s1 = smov 128   ;;  %s3055_s3 = smov 8  }
 0x3c3   : > { %2556 = dma.vmem_to_hbm [thread:$0]  (%p4365_p11), %s4122_s17, 512, %s4120_s19, %s1962_s26, %s3054_s1, %s3054_s1, %s3055_s3  }
 0x3c4 PF: > { %s4369_s15 = sld [smem:[#allocation22_spill]]  ;;  %s4370_s29 = sld [smem:[#allocation27_spill]] }
 0x3c5   : > { %s4371_s16 = sld [smem:[#allocation23_spill]] }
 0x3ca   : > { %s2011_s9 = sand.u32 1, %s4369_s15   ;;  %p4372_p0 = scmp.ne.s32.totalorder %s4370_s29, 0 }
 0x3cb   : > { %p4373_p8 = scmp.ge.s32.totalorder %s4371_s16, 2  ;;  %s2012_s6 = scalar_lea.sflag [#allocation4], %s2011_s9 }
 0x3cd   : > { %p2581_p1 = pnand %p4373_p8, %p4372_p0 }
 0x3cf   : > { %3006 = dma.done.wait (!%p2581_p1), %s2012_s6, 512  }
 0x3d0   : > { %3008 = vsyncadd (!%p2581_p1), %s2012_s6, 4294966784  ;;  %s2021_s13 = scalar_lea.sflag [#allocation15], %s2011_s9 }
 0x3d1   : > { %3010 = dma.done.wait (!%p2581_p1), %s2021_s13, 64  }
 0x3d2   : > { %3012 = vsyncadd (!%p2581_p1), %s2021_s13, 4294967232  ;;  %s4374_s12 = sld [smem:[#allocation24_spill]]  ;;  %s4375_s20 = sld [smem:[#allocation25_spill]] }
 0x3d3   : > { %s4376_s30 = smov %s3019_s10  ;;  %s4377_s10 = smov %s3023_s11 }
 0x3d8   : > { %p31_p11 = scmp.ge.s32.totalorder %s4374_s12, 4   ;;  %s4378_s11 = smov %s4375_s20 }
 0x3da   :  { %33 = sbr.rel (!%p31_p11) target bundleno = 18 (0x12), region = 152 }
 0x3e1   :  { %2026 = vsyncpa [#allocation3], 1 }
 0x3e2   :  { %2028 = vsyncpa [#allocation3 + $0x1], 1 }
 0x3e3   :  { %2029 = vsyncpa [#allocation6], 1 }
 0x3e4   :  { %2031 = vsyncpa [#allocation6 + $0x1], 1 }
 0x3e5   :  { %2032 = vsyncpa [#allocation9], 1 }
 0x3e6   :  { %2033 = vsyncpa [#allocation12], 1 }
 0x3e7   :  { %2034 = vsyncpa [#allocation4], 1 }
 0x3e8   :  { %2036 = vsyncpa [#allocation4 + $0x1], 1 }
 0x3e9   :  { %2037 = vsyncpa [#allocation15], 1 }
 0x3ea   :  { %2039 = vsyncpa [#allocation15 + $0x1], 1 }

</bundles_post_ra>
